<compile_context>
chip_gen: v7x
topology: tpu7x:2x2x1
jax: 0.10.0
libtpu: 0.0.40
codegen_flags: <defaults>
</compile_context>

<pallas_src>
import jax
import jax.numpy as jnp
from jax import lax
from jax.experimental import pallas as pl
from jax.experimental.pallas import tpu as pltpu

_LANE = 128


def _projmap_kernel(x_ref, o_ref):
    # x_ref: (cps, P, N, 128) block; o_ref: (cps, N, N, 128) block.
    cps, P, N, _ = x_ref.shape

    def chunk_body(c, carry):
        # One chunk = 128 (b, h) slices on the lane axis.
        # Hold the whole chunk's input in vregs: P tiles of (N, 128) f32.
        xs = [x_ref[c, p].astype(jnp.float32) for p in range(P)]
        for i in range(N):
            # acc[j, :] = sum_p x[i, p, :] * x[j, p, :]   (row i of x @ x^T)
            acc = xs[0][i : i + 1, :] * xs[0]
            for p in range(1, P):
                acc = acc + xs[p][i : i + 1, :] * xs[p]
            # Single unmasked (N, 128) store per output row.
            o_ref[c, i] = acc.astype(o_ref.dtype)
        return carry

    lax.fori_loop(0, cps, chunk_body, 0)


def projmap(x, *, chunks_per_step=16):
    """Computes x @ x.transpose(-1, -2) for x of shape (B, H, N, P)."""
    B, H, N, P = x.shape
    BH = B * H

    # ---- tiling: BH -> 128-lane chunks -> cps chunks per grid step ----
    c_total = pl.cdiv(BH, _LANE)
    num_steps = pl.cdiv(c_total, chunks_per_step)
    if num_steps > 1 and num_steps % 2 == 1:
        num_steps += 1                      # even split over v7x's 2 TCs
    cps = pl.cdiv(c_total, num_steps)
    c_pad = num_steps * cps
    bh_pad = c_pad * _LANE

    xf = x.reshape(BH, N, P)
    if bh_pad != BH:
        xf = jnp.pad(xf, ((0, bh_pad - BH), (0, 0), (0, 0)))
    # (c_pad, 128, N, P) -> (c_pad, P, N, 128): BH lands on the lane axis.
    xt = jnp.transpose(xf.reshape(c_pad, _LANE, N, P), (0, 3, 2, 1))

    dtype_bytes = jnp.dtype(x.dtype).itemsize
    cost = pl.CostEstimate(
        flops=2 * bh_pad * N * N * P,
        transcendentals=0,
        bytes_accessed=bh_pad * (N * P + N * N) * dtype_bytes,
    )

    yt = pl.pallas_call(
        _projmap_kernel,
        out_shape=jax.ShapeDtypeStruct((c_pad, N, N, _LANE), x.dtype),
        grid_spec=pltpu.PrefetchScalarGridSpec(
            num_scalar_prefetch=0,
            grid=(num_steps,),
            in_specs=[pl.BlockSpec((cps, P, N, _LANE), lambda s: (s, 0, 0, 0))],
            out_specs=pl.BlockSpec((cps, N, N, _LANE), lambda s: (s, 0, 0, 0)),
        ),
        compiler_params=pltpu.CompilerParams(
            dimension_semantics=("parallel",),
            vmem_limit_bytes=32 * 1024 * 1024,
        ),
        cost_estimate=cost,
    )(xt)

    # (c_pad, N, N, 128) -> (bh_pad, N, N) -> (B, H, N, N)
    y = jnp.transpose(yt, (0, 3, 1, 2)).reshape(bh_pad, N, N)
    if bh_pad != BH:
        y = y[:BH]
    return y.reshape(B, H, N, N)


if __name__ == "__main__":
    key = jax.random.PRNGKey(0)
    # Small shapes: batch=2, channels=4, n=16, p=8 (Grassmann point: 16x8 matrix)
    B, H, N, P = 2, 4, 16, 8
    x = jax.random.normal(key, (B, H, N, P), dtype=jnp.float32)

    fn = jax.jit(projmap)
    out = jax.block_until_ready(fn(x))

    # Reference check (mirrors torch.matmul(x, x.transpose(-1, -2)))
    ref = jnp.matmul(x, jnp.swapaxes(x, -1, -2))
    assert out.shape == (B, H, N, N), out.shape
    assert jnp.allclose(out, ref, atol=1e-5, rtol=1e-5), "mismatch vs reference"

    print("KERNEL_OK")
</pallas_src>

<mosaic_0001>
module attributes {stable_mosaic.version = 11 : i64} {
  func.func @_projmap_kernel(%arg0: i32, %arg1: memref<1x8x16x128xf32, #tpu.memory_space<vmem>>, %arg2: memref<1x16x16x128xf32, #tpu.memory_space<vmem>>) attributes {dimension_semantics = [#tpu.dimension_semantics<parallel>], iteration_bounds = array<i64: 1>, scalar_prefetch = 0 : i64, scratch_operands = 0 : i64, tpu.core_type = #tpu.core_type<tc>, window_params = [{transform_indices = @transform_0, window_bounds = array<i64: 1, 8, 16, 128>}, {transform_indices = @transform_1, window_bounds = array<i64: 1, 16, 16, 128>}]} {
    %c0_i32 = arith.constant 0 : i32
    %0 = arith.index_cast %c0_i32 : i32 to index
    %c0 = arith.constant 0 : index
    %c0_0 = arith.constant 0 : index
    %c0_1 = arith.constant 0 : index
    %1 = vector.load %arg1[%0, %c0, %c0_0, %c0_1] : memref<1x8x16x128xf32, #tpu.memory_space<vmem>>, vector<1x1x16x128xf32>
    %2 = vector.shape_cast %1 : vector<1x1x16x128xf32> to vector<16x128xf32>
    %3 = arith.index_cast %c0_i32 : i32 to index
    %c1 = arith.constant 1 : index
    %c0_2 = arith.constant 0 : index
    %c0_3 = arith.constant 0 : index
    %4 = vector.load %arg1[%3, %c1, %c0_2, %c0_3] : memref<1x8x16x128xf32, #tpu.memory_space<vmem>>, vector<1x1x16x128xf32>
    %5 = vector.shape_cast %4 : vector<1x1x16x128xf32> to vector<16x128xf32>
    %6 = arith.index_cast %c0_i32 : i32 to index
    %c2 = arith.constant 2 : index
    %c0_4 = arith.constant 0 : index
    %c0_5 = arith.constant 0 : index
    %7 = vector.load %arg1[%6, %c2, %c0_4, %c0_5] : memref<1x8x16x128xf32, #tpu.memory_space<vmem>>, vector<1x1x16x128xf32>
    %8 = vector.shape_cast %7 : vector<1x1x16x128xf32> to vector<16x128xf32>
    %9 = arith.index_cast %c0_i32 : i32 to index
    %c3 = arith.constant 3 : index
    %c0_6 = arith.constant 0 : index
    %c0_7 = arith.constant 0 : index
    %10 = vector.load %arg1[%9, %c3, %c0_6, %c0_7] : memref<1x8x16x128xf32, #tpu.memory_space<vmem>>, vector<1x1x16x128xf32>
    %11 = vector.shape_cast %10 : vector<1x1x16x128xf32> to vector<16x128xf32>
    %12 = arith.index_cast %c0_i32 : i32 to index
    %c4 = arith.constant 4 : index
    %c0_8 = arith.constant 0 : index
    %c0_9 = arith.constant 0 : index
    %13 = vector.load %arg1[%12, %c4, %c0_8, %c0_9] : memref<1x8x16x128xf32, #tpu.memory_space<vmem>>, vector<1x1x16x128xf32>
    %14 = vector.shape_cast %13 : vector<1x1x16x128xf32> to vector<16x128xf32>
    %15 = arith.index_cast %c0_i32 : i32 to index
    %c5 = arith.constant 5 : index
    %c0_10 = arith.constant 0 : index
    %c0_11 = arith.constant 0 : index
    %16 = vector.load %arg1[%15, %c5, %c0_10, %c0_11] : memref<1x8x16x128xf32, #tpu.memory_space<vmem>>, vector<1x1x16x128xf32>
    %17 = vector.shape_cast %16 : vector<1x1x16x128xf32> to vector<16x128xf32>
    %18 = arith.index_cast %c0_i32 : i32 to index
    %c6 = arith.constant 6 : index
    %c0_12 = arith.constant 0 : index
    %c0_13 = arith.constant 0 : index
    %19 = vector.load %arg1[%18, %c6, %c0_12, %c0_13] : memref<1x8x16x128xf32, #tpu.memory_space<vmem>>, vector<1x1x16x128xf32>
    %20 = vector.shape_cast %19 : vector<1x1x16x128xf32> to vector<16x128xf32>
    %21 = arith.index_cast %c0_i32 : i32 to index
    %c7 = arith.constant 7 : index
    %c0_14 = arith.constant 0 : index
    %c0_15 = arith.constant 0 : index
    %22 = vector.load %arg1[%21, %c7, %c0_14, %c0_15] : memref<1x8x16x128xf32, #tpu.memory_space<vmem>>, vector<1x1x16x128xf32>
    %23 = vector.shape_cast %22 : vector<1x1x16x128xf32> to vector<16x128xf32>
    %24 = vector.extract_strided_slice %2 {offsets = [0, 0], sizes = [1, 128], strides = [1, 1]} : vector<16x128xf32> to vector<1x128xf32>
    %25 = vector.broadcast %24 : vector<1x128xf32> to vector<16x128xf32>
    %26 = arith.mulf %25, %2 : vector<16x128xf32>
    %27 = vector.extract_strided_slice %5 {offsets = [0, 0], sizes = [1, 128], strides = [1, 1]} : vector<16x128xf32> to vector<1x128xf32>
    %28 = vector.broadcast %27 : vector<1x128xf32> to vector<16x128xf32>
    %29 = arith.mulf %28, %5 : vector<16x128xf32>
    %30 = arith.addf %26, %29 : vector<16x128xf32>
    %31 = vector.extract_strided_slice %8 {offsets = [0, 0], sizes = [1, 128], strides = [1, 1]} : vector<16x128xf32> to vector<1x128xf32>
    %32 = vector.broadcast %31 : vector<1x128xf32> to vector<16x128xf32>
    %33 = arith.mulf %32, %8 : vector<16x128xf32>
    %34 = arith.addf %30, %33 : vector<16x128xf32>
    %35 = vector.extract_strided_slice %11 {offsets = [0, 0], sizes = [1, 128], strides = [1, 1]} : vector<16x128xf32> to vector<1x128xf32>
    %36 = vector.broadcast %35 : vector<1x128xf32> to vector<16x128xf32>
    %37 = arith.mulf %36, %11 : vector<16x128xf32>
    %38 = arith.addf %34, %37 : vector<16x128xf32>
    %39 = vector.extract_strided_slice %14 {offsets = [0, 0], sizes = [1, 128], strides = [1, 1]} : vector<16x128xf32> to vector<1x128xf32>
    %40 = vector.broadcast %39 : vector<1x128xf32> to vector<16x128xf32>
    %41 = arith.mulf %40, %14 : vector<16x128xf32>
    %42 = arith.addf %38, %41 : vector<16x128xf32>
    %43 = vector.extract_strided_slice %17 {offsets = [0, 0], sizes = [1, 128], strides = [1, 1]} : vector<16x128xf32> to vector<1x128xf32>
    %44 = vector.broadcast %43 : vector<1x128xf32> to vector<16x128xf32>
    %45 = arith.mulf %44, %17 : vector<16x128xf32>
    %46 = arith.addf %42, %45 : vector<16x128xf32>
    %47 = vector.extract_strided_slice %20 {offsets = [0, 0], sizes = [1, 128], strides = [1, 1]} : vector<16x128xf32> to vector<1x128xf32>
    %48 = vector.broadcast %47 : vector<1x128xf32> to vector<16x128xf32>
    %49 = arith.mulf %48, %20 : vector<16x128xf32>
    %50 = arith.addf %46, %49 : vector<16x128xf32>
    %51 = vector.extract_strided_slice %23 {offsets = [0, 0], sizes = [1, 128], strides = [1, 1]} : vector<16x128xf32> to vector<1x128xf32>
    %52 = vector.broadcast %51 : vector<1x128xf32> to vector<16x128xf32>
    %53 = arith.mulf %52, %23 : vector<16x128xf32>
    %54 = arith.addf %50, %53 : vector<16x128xf32>
    %55 = arith.index_cast %c0_i32 : i32 to index
    %c0_16 = arith.constant 0 : index
    %c0_17 = arith.constant 0 : index
    %c0_18 = arith.constant 0 : index
    %56 = vector.load %arg2[%55, %c0_16, %c0_17, %c0_18] : memref<1x16x16x128xf32, #tpu.memory_space<vmem>>, vector<1x1x16x128xf32>
    %57 = vector.shape_cast %56 : vector<1x1x16x128xf32> to vector<16x128xf32>
    %58 = vector.shape_cast %54 : vector<16x128xf32> to vector<1x1x16x128xf32>
    tpu.vector_store %arg2[%55, %c0_16, %c0_17, %c0_18], %58 {strides = array<i32>} : memref<1x16x16x128xf32, #tpu.memory_space<vmem>>, vector<1x1x16x128xf32>,
    %59 = vector.extract_strided_slice %2 {offsets = [1, 0], sizes = [1, 128], strides = [1, 1]} : vector<16x128xf32> to vector<1x128xf32>
    %60 = vector.broadcast %59 : vector<1x128xf32> to vector<16x128xf32>
    %61 = arith.mulf %60, %2 : vector<16x128xf32>
    %62 = vector.extract_strided_slice %5 {offsets = [1, 0], sizes = [1, 128], strides = [1, 1]} : vector<16x128xf32> to vector<1x128xf32>
    %63 = vector.broadcast %62 : vector<1x128xf32> to vector<16x128xf32>
    %64 = arith.mulf %63, %5 : vector<16x128xf32>
    %65 = arith.addf %61, %64 : vector<16x128xf32>
    %66 = vector.extract_strided_slice %8 {offsets = [1, 0], sizes = [1, 128], strides = [1, 1]} : vector<16x128xf32> to vector<1x128xf32>
    %67 = vector.broadcast %66 : vector<1x128xf32> to vector<16x128xf32>
    %68 = arith.mulf %67, %8 : vector<16x128xf32>
    %69 = arith.addf %65, %68 : vector<16x128xf32>
    %70 = vector.extract_strided_slice %11 {offsets = [1, 0], sizes = [1, 128], strides = [1, 1]} : vector<16x128xf32> to vector<1x128xf32>
    %71 = vector.broadcast %70 : vector<1x128xf32> to vector<16x128xf32>
    %72 = arith.mulf %71, %11 : vector<16x128xf32>
    %73 = arith.addf %69, %72 : vector<16x128xf32>
    %74 = vector.extract_strided_slice %14 {offsets = [1, 0], sizes = [1, 128], strides = [1, 1]} : vector<16x128xf32> to vector<1x128xf32>
    %75 = vector.broadcast %74 : vector<1x128xf32> to vector<16x128xf32>
    %76 = arith.mulf %75, %14 : vector<16x128xf32>
    %77 = arith.addf %73, %76 : vector<16x128xf32>
    %78 = vector.extract_strided_slice %17 {offsets = [1, 0], sizes = [1, 128], strides = [1, 1]} : vector<16x128xf32> to vector<1x128xf32>
    %79 = vector.broadcast %78 : vector<1x128xf32> to vector<16x128xf32>
    %80 = arith.mulf %79, %17 : vector<16x128xf32>
    %81 = arith.addf %77, %80 : vector<16x128xf32>
    %82 = vector.extract_strided_slice %20 {offsets = [1, 0], sizes = [1, 128], strides = [1, 1]} : vector<16x128xf32> to vector<1x128xf32>
    %83 = vector.broadcast %82 : vector<1x128xf32> to vector<16x128xf32>
    %84 = arith.mulf %83, %20 : vector<16x128xf32>
    %85 = arith.addf %81, %84 : vector<16x128xf32>
    %86 = vector.extract_strided_slice %23 {offsets = [1, 0], sizes = [1, 128], strides = [1, 1]} : vector<16x128xf32> to vector<1x128xf32>
    %87 = vector.broadcast %86 : vector<1x128xf32> to vector<16x128xf32>
    %88 = arith.mulf %87, %23 : vector<16x128xf32>
    %89 = arith.addf %85, %88 : vector<16x128xf32>
    %90 = arith.index_cast %c0_i32 : i32 to index
    %c1_19 = arith.constant 1 : index
    %c0_20 = arith.constant 0 : index
    %c0_21 = arith.constant 0 : index
    %91 = vector.load %arg2[%90, %c1_19, %c0_20, %c0_21] : memref<1x16x16x128xf32, #tpu.memory_space<vmem>>, vector<1x1x16x128xf32>
    %92 = vector.shape_cast %91 : vector<1x1x16x128xf32> to vector<16x128xf32>
    %93 = vector.shape_cast %89 : vector<16x128xf32> to vector<1x1x16x128xf32>
    tpu.vector_store %arg2[%90, %c1_19, %c0_20, %c0_21], %93 {strides = array<i32>} : memref<1x16x16x128xf32, #tpu.memory_space<vmem>>, vector<1x1x16x128xf32>,
    %94 = vector.extract_strided_slice %2 {offsets = [2, 0], sizes = [1, 128], strides = [1, 1]} : vector<16x128xf32> to vector<1x128xf32>
    %95 = vector.broadcast %94 : vector<1x128xf32> to vector<16x128xf32>
    %96 = arith.mulf %95, %2 : vector<16x128xf32>
    %97 = vector.extract_strided_slice %5 {offsets = [2, 0], sizes = [1, 128], strides = [1, 1]} : vector<16x128xf32> to vector<1x128xf32>
    %98 = vector.broadcast %97 : vector<1x128xf32> to vector<16x128xf32>
    %99 = arith.mulf %98, %5 : vector<16x128xf32>
    %100 = arith.addf %96, %99 : vector<16x128xf32>
    %101 = vector.extract_strided_slice %8 {offsets = [2, 0], sizes = [1, 128], strides = [1, 1]} : vector<16x128xf32> to vector<1x128xf32>
    %102 = vector.broadcast %101 : vector<1x128xf32> to vector<16x128xf32>
    %103 = arith.mulf %102, %8 : vector<16x128xf32>
    %104 = arith.addf %100, %103 : vector<16x128xf32>
    %105 = vector.extract_strided_slice %11 {offsets = [2, 0], sizes = [1, 128], strides = [1, 1]} : vector<16x128xf32> to vector<1x128xf32>
    %106 = vector.broadcast %105 : vector<1x128xf32> to vector<16x128xf32>
    %107 = arith.mulf %106, %11 : vector<16x128xf32>
    %108 = arith.addf %104, %107 : vector<16x128xf32>
    %109 = vector.extract_strided_slice %14 {offsets = [2, 0], sizes = [1, 128], strides = [1, 1]} : vector<16x128xf32> to vector<1x128xf32>
    %110 = vector.broadcast %109 : vector<1x128xf32> to vector<16x128xf32>
    %111 = arith.mulf %110, %14 : vector<16x128xf32>
    %112 = arith.addf %108, %111 : vector<16x128xf32>
    %113 = vector.extract_strided_slice %17 {offsets = [2, 0], sizes = [1, 128], strides = [1, 1]} : vector<16x128xf32> to vector<1x128xf32>
    %114 = vector.broadcast %113 : vector<1x128xf32> to vector<16x128xf32>
    %115 = arith.mulf %114, %17 : vector<16x128xf32>
    %116 = arith.addf %112, %115 : vector<16x128xf32>
    %117 = vector.extract_strided_slice %20 {offsets = [2, 0], sizes = [1, 128], strides = [1, 1]} : vector<16x128xf32> to vector<1x128xf32>
    %118 = vector.broadcast %117 : vector<1x128xf32> to vector<16x128xf32>
    %119 = arith.mulf %118, %20 : vector<16x128xf32>
    %120 = arith.addf %116, %119 : vector<16x128xf32>
    %121 = vector.extract_strided_slice %23 {offsets = [2, 0], sizes = [1, 128], strides = [1, 1]} : vector<16x128xf32> to vector<1x128xf32>
    %122 = vector.broadcast %121 : vector<1x128xf32> to vector<16x128xf32>
    %123 = arith.mulf %122, %23 : vector<16x128xf32>
    %124 = arith.addf %120, %123 : vector<16x128xf32>
    %125 = arith.index_cast %c0_i32 : i32 to index
    %c2_22 = arith.constant 2 : index
    %c0_23 = arith.constant 0 : index
    %c0_24 = arith.constant 0 : index
    %126 = vector.load %arg2[%125, %c2_22, %c0_23, %c0_24] : memref<1x16x16x128xf32, #tpu.memory_space<vmem>>, vector<1x1x16x128xf32>
    %127 = vector.shape_cast %126 : vector<1x1x16x128xf32> to vector<16x128xf32>
    %128 = vector.shape_cast %124 : vector<16x128xf32> to vector<1x1x16x128xf32>
    tpu.vector_store %arg2[%125, %c2_22, %c0_23, %c0_24], %128 {strides = array<i32>} : memref<1x16x16x128xf32, #tpu.memory_space<vmem>>, vector<1x1x16x128xf32>,
    %129 = vector.extract_strided_slice %2 {offsets = [3, 0], sizes = [1, 128], strides = [1, 1]} : vector<16x128xf32> to vector<1x128xf32>
    %130 = vector.broadcast %129 : vector<1x128xf32> to vector<16x128xf32>
    %131 = arith.mulf %130, %2 : vector<16x128xf32>
    %132 = vector.extract_strided_slice %5 {offsets = [3, 0], sizes = [1, 128], strides = [1, 1]} : vector<16x128xf32> to vector<1x128xf32>
    %133 = vector.broadcast %132 : vector<1x128xf32> to vector<16x128xf32>
    %134 = arith.mulf %133, %5 : vector<16x128xf32>
    %135 = arith.addf %131, %134 : vector<16x128xf32>
    %136 = vector.extract_strided_slice %8 {offsets = [3, 0], sizes = [1, 128], strides = [1, 1]} : vector<16x128xf32> to vector<1x128xf32>
    %137 = vector.broadcast %136 : vector<1x128xf32> to vector<16x128xf32>
    %138 = arith.mulf %137, %8 : vector<16x128xf32>
    %139 = arith.addf %135, %138 : vector<16x128xf32>
    %140 = vector.extract_strided_slice %11 {offsets = [3, 0], sizes = [1, 128], strides = [1, 1]} : vector<16x128xf32> to vector<1x128xf32>
    %141 = vector.broadcast %140 : vector<1x128xf32> to vector<16x128xf32>
    %142 = arith.mulf %141, %11 : vector<16x128xf32>
    %143 = arith.addf %139, %142 : vector<16x128xf32>
    %144 = vector.extract_strided_slice %14 {offsets = [3, 0], sizes = [1, 128], strides = [1, 1]} : vector<16x128xf32> to vector<1x128xf32>
    %145 = vector.broadcast %144 : vector<1x128xf32> to vector<16x128xf32>
    %146 = arith.mulf %145, %14 : vector<16x128xf32>
    %147 = arith.addf %143, %146 : vector<16x128xf32>
    %148 = vector.extract_strided_slice %17 {offsets = [3, 0], sizes = [1, 128], strides = [1, 1]} : vector<16x128xf32> to vector<1x128xf32>
    %149 = vector.broadcast %148 : vector<1x128xf32> to vector<16x128xf32>
    %150 = arith.mulf %149, %17 : vector<16x128xf32>
    %151 = arith.addf %147, %150 : vector<16x128xf32>
    %152 = vector.extract_strided_slice %20 {offsets = [3, 0], sizes = [1, 128], strides = [1, 1]} : vector<16x128xf32> to vector<1x128xf32>
    %153 = vector.broadcast %152 : vector<1x128xf32> to vector<16x128xf32>
    %154 = arith.mulf %153, %20 : vector<16x128xf32>
    %155 = arith.addf %151, %154 : vector<16x128xf32>
    %156 = vector.extract_strided_slice %23 {offsets = [3, 0], sizes = [1, 128], strides = [1, 1]} : vector<16x128xf32> to vector<1x128xf32>
    %157 = vector.broadcast %156 : vector<1x128xf32> to vector<16x128xf32>
    %158 = arith.mulf %157, %23 : vector<16x128xf32>
    %159 = arith.addf %155, %158 : vector<16x128xf32>
    %160 = arith.index_cast %c0_i32 : i32 to index
    %c3_25 = arith.constant 3 : index
    %c0_26 = arith.constant 0 : index
    %c0_27 = arith.constant 0 : index
    %161 = vector.load %arg2[%160, %c3_25, %c0_26, %c0_27] : memref<1x16x16x128xf32, #tpu.memory_space<vmem>>, vector<1x1x16x128xf32>
    %162 = vector.shape_cast %161 : vector<1x1x16x128xf32> to vector<16x128xf32>
    %163 = vector.shape_cast %159 : vector<16x128xf32> to vector<1x1x16x128xf32>
    tpu.vector_store %arg2[%160, %c3_25, %c0_26, %c0_27], %163 {strides = array<i32>} : memref<1x16x16x128xf32, #tpu.memory_space<vmem>>, vector<1x1x16x128xf32>,
    %164 = vector.extract_strided_slice %2 {offsets = [4, 0], sizes = [1, 128], strides = [1, 1]} : vector<16x128xf32> to vector<1x128xf32>
    %165 = vector.broadcast %164 : vector<1x128xf32> to vector<16x128xf32>
    %166 = arith.mulf %165, %2 : vector<16x128xf32>
    %167 = vector.extract_strided_slice %5 {offsets = [4, 0], sizes = [1, 128], strides = [1, 1]} : vector<16x128xf32> to vector<1x128xf32>
    %168 = vector.broadcast %167 : vector<1x128xf32> to vector<16x128xf32>
    %169 = arith.mulf %168, %5 : vector<16x128xf32>
    %170 = arith.addf %166, %169 : vector<16x128xf32>
    %171 = vector.extract_strided_slice %8 {offsets = [4, 0], sizes = [1, 128], strides = [1, 1]} : vector<16x128xf32> to vector<1x128xf32>
    %172 = vector.broadcast %171 : vector<1x128xf32> to vector<16x128xf32>
    %173 = arith.mulf %172, %8 : vector<16x128xf32>
    %174 = arith.addf %170, %173 : vector<16x128xf32>
    %175 = vector.extract_strided_slice %11 {offsets = [4, 0], sizes = [1, 128], strides = [1, 1]} : vector<16x128xf32> to vector<1x128xf32>
    %176 = vector.broadcast %175 : vector<1x128xf32> to vector<16x128xf32>
    %177 = arith.mulf %176, %11 : vector<16x128xf32>
    %178 = arith.addf %174, %177 : vector<16x128xf32>
    %179 = vector.extract_strided_slice %14 {offsets = [4, 0], sizes = [1, 128], strides = [1, 1]} : vector<16x128xf32> to vector<1x128xf32>
    %180 = vector.broadcast %179 : vector<1x128xf32> to vector<16x128xf32>
    %181 = arith.mulf %180, %14 : vector<16x128xf32>
    %182 = arith.addf %178, %181 : vector<16x128xf32>
    %183 = vector.extract_strided_slice %17 {offsets = [4, 0], sizes = [1, 128], strides = [1, 1]} : vector<16x128xf32> to vector<1x128xf32>
    %184 = vector.broadcast %183 : vector<1x128xf32> to vector<16x128xf32>
    %185 = arith.mulf %184, %17 : vector<16x128xf32>
    %186 = arith.addf %182, %185 : vector<16x128xf32>
    %187 = vector.extract_strided_slice %20 {offsets = [4, 0], sizes = [1, 128], strides = [1, 1]} : vector<16x128xf32> to vector<1x128xf32>
    %188 = vector.broadcast %187 : vector<1x128xf32> to vector<16x128xf32>
    %189 = arith.mulf %188, %20 : vector<16x128xf32>
    %190 = arith.addf %186, %189 : vector<16x128xf32>
    %191 = vector.extract_strided_slice %23 {offsets = [4, 0], sizes = [1, 128], strides = [1, 1]} : vector<16x128xf32> to vector<1x128xf32>
    %192 = vector.broadcast %191 : vector<1x128xf32> to vector<16x128xf32>
    %193 = arith.mulf %192, %23 : vector<16x128xf32>
    %194 = arith.addf %190, %193 : vector<16x128xf32>
    %195 = arith.index_cast %c0_i32 : i32 to index
    %c4_28 = arith.constant 4 : index
    %c0_29 = arith.constant 0 : index
    %c0_30 = arith.constant 0 : index
    %196 = vector.load %arg2[%195, %c4_28, %c0_29, %c0_30] : memref<1x16x16x128xf32, #tpu.memory_space<vmem>>, vector<1x1x16x128xf32>
    %197 = vector.shape_cast %196 : vector<1x1x16x128xf32> to vector<16x128xf32>
    %198 = vector.shape_cast %194 : vector<16x128xf32> to vector<1x1x16x128xf32>
    tpu.vector_store %arg2[%195, %c4_28, %c0_29, %c0_30], %198 {strides = array<i32>} : memref<1x16x16x128xf32, #tpu.memory_space<vmem>>, vector<1x1x16x128xf32>,
    %199 = vector.extract_strided_slice %2 {offsets = [5, 0], sizes = [1, 128], strides = [1, 1]} : vector<16x128xf32> to vector<1x128xf32>
    %200 = vector.broadcast %199 : vector<1x128xf32> to vector<16x128xf32>
    %201 = arith.mulf %200, %2 : vector<16x128xf32>
    %202 = vector.extract_strided_slice %5 {offsets = [5, 0], sizes = [1, 128], strides = [1, 1]} : vector<16x128xf32> to vector<1x128xf32>
    %203 = vector.broadcast %202 : vector<1x128xf32> to vector<16x128xf32>
    %204 = arith.mulf %203, %5 : vector<16x128xf32>
    %205 = arith.addf %201, %204 : vector<16x128xf32>
    %206 = vector.extract_strided_slice %8 {offsets = [5, 0], sizes = [1, 128], strides = [1, 1]} : vector<16x128xf32> to vector<1x128xf32>
    %207 = vector.broadcast %206 : vector<1x128xf32> to vector<16x128xf32>
    %208 = arith.mulf %207, %8 : vector<16x128xf32>
    %209 = arith.addf %205, %208 : vector<16x128xf32>
    %210 = vector.extract_strided_slice %11 {offsets = [5, 0], sizes = [1, 128], strides = [1, 1]} : vector<16x128xf32> to vector<1x128xf32>
    %211 = vector.broadcast %210 : vector<1x128xf32> to vector<16x128xf32>
    %212 = arith.mulf %211, %11 : vector<16x128xf32>
    %213 = arith.addf %209, %212 : vector<16x128xf32>
    %214 = vector.extract_strided_slice %14 {offsets = [5, 0], sizes = [1, 128], strides = [1, 1]} : vector<16x128xf32> to vector<1x128xf32>
    %215 = vector.broadcast %214 : vector<1x128xf32> to vector<16x128xf32>
    %216 = arith.mulf %215, %14 : vector<16x128xf32>
    %217 = arith.addf %213, %216 : vector<16x128xf32>
    %218 = vector.extract_strided_slice %17 {offsets = [5, 0], sizes = [1, 128], strides = [1, 1]} : vector<16x128xf32> to vector<1x128xf32>
    %219 = vector.broadcast %218 : vector<1x128xf32> to vector<16x128xf32>
    %220 = arith.mulf %219, %17 : vector<16x128xf32>
    %221 = arith.addf %217, %220 : vector<16x128xf32>
    %222 = vector.extract_strided_slice %20 {offsets = [5, 0], sizes = [1, 128], strides = [1, 1]} : vector<16x128xf32> to vector<1x128xf32>
    %223 = vector.broadcast %222 : vector<1x128xf32> to vector<16x128xf32>
    %224 = arith.mulf %223, %20 : vector<16x128xf32>
    %225 = arith.addf %221, %224 : vector<16x128xf32>
    %226 = vector.extract_strided_slice %23 {offsets = [5, 0], sizes = [1, 128], strides = [1, 1]} : vector<16x128xf32> to vector<1x128xf32>
    %227 = vector.broadcast %226 : vector<1x128xf32> to vector<16x128xf32>
    %228 = arith.mulf %227, %23 : vector<16x128xf32>
    %229 = arith.addf %225, %228 : vector<16x128xf32>
    %230 = arith.index_cast %c0_i32 : i32 to index
    %c5_31 = arith.constant 5 : index
    %c0_32 = arith.constant 0 : index
    %c0_33 = arith.constant 0 : index
    %231 = vector.load %arg2[%230, %c5_31, %c0_32, %c0_33] : memref<1x16x16x128xf32, #tpu.memory_space<vmem>>, vector<1x1x16x128xf32>
    %232 = vector.shape_cast %231 : vector<1x1x16x128xf32> to vector<16x128xf32>
    %233 = vector.shape_cast %229 : vector<16x128xf32> to vector<1x1x16x128xf32>
    tpu.vector_store %arg2[%230, %c5_31, %c0_32, %c0_33], %233 {strides = array<i32>} : memref<1x16x16x128xf32, #tpu.memory_space<vmem>>, vector<1x1x16x128xf32>,
    %234 = vector.extract_strided_slice %2 {offsets = [6, 0], sizes = [1, 128], strides = [1, 1]} : vector<16x128xf32> to vector<1x128xf32>
    %235 = vector.broadcast %234 : vector<1x128xf32> to vector<16x128xf32>
    %236 = arith.mulf %235, %2 : vector<16x128xf32>
    %237 = vector.extract_strided_slice %5 {offsets = [6, 0], sizes = [1, 128], strides = [1, 1]} : vector<16x128xf32> to vector<1x128xf32>
    %238 = vector.broadcast %237 : vector<1x128xf32> to vector<16x128xf32>
    %239 = arith.mulf %238, %5 : vector<16x128xf32>
    %240 = arith.addf %236, %239 : vector<16x128xf32>
    %241 = vector.extract_strided_slice %8 {offsets = [6, 0], sizes = [1, 128], strides = [1, 1]} : vector<16x128xf32> to vector<1x128xf32>
    %242 = vector.broadcast %241 : vector<1x128xf32> to vector<16x128xf32>
    %243 = arith.mulf %242, %8 : vector<16x128xf32>
    %244 = arith.addf %240, %243 : vector<16x128xf32>
    %245 = vector.extract_strided_slice %11 {offsets = [6, 0], sizes = [1, 128], strides = [1, 1]} : vector<16x128xf32> to vector<1x128xf32>
    %246 = vector.broadcast %245 : vector<1x128xf32> to vector<16x128xf32>
    %247 = arith.mulf %246, %11 : vector<16x128xf32>
    %248 = arith.addf %244, %247 : vector<16x128xf32>
    %249 = vector.extract_strided_slice %14 {offsets = [6, 0], sizes = [1, 128], strides = [1, 1]} : vector<16x128xf32> to vector<1x128xf32>
    %250 = vector.broadcast %249 : vector<1x128xf32> to vector<16x128xf32>
    %251 = arith.mulf %250, %14 : vector<16x128xf32>
    %252 = arith.addf %248, %251 : vector<16x128xf32>
    %253 = vector.extract_strided_slice %17 {offsets = [6, 0], sizes = [1, 128], strides = [1, 1]} : vector<16x128xf32> to vector<1x128xf32>
    %254 = vector.broadcast %253 : vector<1x128xf32> to vector<16x128xf32>
    %255 = arith.mulf %254, %17 : vector<16x128xf32>
    %256 = arith.addf %252, %255 : vector<16x128xf32>
    %257 = vector.extract_strided_slice %20 {offsets = [6, 0], sizes = [1, 128], strides = [1, 1]} : vector<16x128xf32> to vector<1x128xf32>
    %258 = vector.broadcast %257 : vector<1x128xf32> to vector<16x128xf32>
    %259 = arith.mulf %258, %20 : vector<16x128xf32>
    %260 = arith.addf %256, %259 : vector<16x128xf32>
    %261 = vector.extract_strided_slice %23 {offsets = [6, 0], sizes = [1, 128], strides = [1, 1]} : vector<16x128xf32> to vector<1x128xf32>
    %262 = vector.broadcast %261 : vector<1x128xf32> to vector<16x128xf32>
    %263 = arith.mulf %262, %23 : vector<16x128xf32>
    %264 = arith.addf %260, %263 : vector<16x128xf32>
    %265 = arith.index_cast %c0_i32 : i32 to index
    %c6_34 = arith.constant 6 : index
    %c0_35 = arith.constant 0 : index
    %c0_36 = arith.constant 0 : index
    %266 = vector.load %arg2[%265, %c6_34, %c0_35, %c0_36] : memref<1x16x16x128xf32, #tpu.memory_space<vmem>>, vector<1x1x16x128xf32>
    %267 = vector.shape_cast %266 : vector<1x1x16x128xf32> to vector<16x128xf32>
    %268 = vector.shape_cast %264 : vector<16x128xf32> to vector<1x1x16x128xf32>
    tpu.vector_store %arg2[%265, %c6_34, %c0_35, %c0_36], %268 {strides = array<i32>} : memref<1x16x16x128xf32, #tpu.memory_space<vmem>>, vector<1x1x16x128xf32>,
    %269 = vector.extract_strided_slice %2 {offsets = [7, 0], sizes = [1, 128], strides = [1, 1]} : vector<16x128xf32> to vector<1x128xf32>
    %270 = vector.broadcast %269 : vector<1x128xf32> to vector<16x128xf32>
    %271 = arith.mulf %270, %2 : vector<16x128xf32>
    %272 = vector.extract_strided_slice %5 {offsets = [7, 0], sizes = [1, 128], strides = [1, 1]} : vector<16x128xf32> to vector<1x128xf32>
    %273 = vector.broadcast %272 : vector<1x128xf32> to vector<16x128xf32>
    %274 = arith.mulf %273, %5 : vector<16x128xf32>
    %275 = arith.addf %271, %274 : vector<16x128xf32>
    %276 = vector.extract_strided_slice %8 {offsets = [7, 0], sizes = [1, 128], strides = [1, 1]} : vector<16x128xf32> to vector<1x128xf32>
    %277 = vector.broadcast %276 : vector<1x128xf32> to vector<16x128xf32>
    %278 = arith.mulf %277, %8 : vector<16x128xf32>
    %279 = arith.addf %275, %278 : vector<16x128xf32>
    %280 = vector.extract_strided_slice %11 {offsets = [7, 0], sizes = [1, 128], strides = [1, 1]} : vector<16x128xf32> to vector<1x128xf32>
    %281 = vector.broadcast %280 : vector<1x128xf32> to vector<16x128xf32>
    %282 = arith.mulf %281, %11 : vector<16x128xf32>
    %283 = arith.addf %279, %282 : vector<16x128xf32>
    %284 = vector.extract_strided_slice %14 {offsets = [7, 0], sizes = [1, 128], strides = [1, 1]} : vector<16x128xf32> to vector<1x128xf32>
    %285 = vector.broadcast %284 : vector<1x128xf32> to vector<16x128xf32>
    %286 = arith.mulf %285, %14 : vector<16x128xf32>
    %287 = arith.addf %283, %286 : vector<16x128xf32>
    %288 = vector.extract_strided_slice %17 {offsets = [7, 0], sizes = [1, 128], strides = [1, 1]} : vector<16x128xf32> to vector<1x128xf32>
    %289 = vector.broadcast %288 : vector<1x128xf32> to vector<16x128xf32>
    %290 = arith.mulf %289, %17 : vector<16x128xf32>
    %291 = arith.addf %287, %290 : vector<16x128xf32>
    %292 = vector.extract_strided_slice %20 {offsets = [7, 0], sizes = [1, 128], strides = [1, 1]} : vector<16x128xf32> to vector<1x128xf32>
    %293 = vector.broadcast %292 : vector<1x128xf32> to vector<16x128xf32>
    %294 = arith.mulf %293, %20 : vector<16x128xf32>
    %295 = arith.addf %291, %294 : vector<16x128xf32>
    %296 = vector.extract_strided_slice %23 {offsets = [7, 0], sizes = [1, 128], strides = [1, 1]} : vector<16x128xf32> to vector<1x128xf32>
    %297 = vector.broadcast %296 : vector<1x128xf32> to vector<16x128xf32>
    %298 = arith.mulf %297, %23 : vector<16x128xf32>
    %299 = arith.addf %295, %298 : vector<16x128xf32>
    %300 = arith.index_cast %c0_i32 : i32 to index
    %c7_37 = arith.constant 7 : index
    %c0_38 = arith.constant 0 : index
    %c0_39 = arith.constant 0 : index
    %301 = vector.load %arg2[%300, %c7_37, %c0_38, %c0_39] : memref<1x16x16x128xf32, #tpu.memory_space<vmem>>, vector<1x1x16x128xf32>
    %302 = vector.shape_cast %301 : vector<1x1x16x128xf32> to vector<16x128xf32>
    %303 = vector.shape_cast %299 : vector<16x128xf32> to vector<1x1x16x128xf32>
    tpu.vector_store %arg2[%300, %c7_37, %c0_38, %c0_39], %303 {strides = array<i32>} : memref<1x16x16x128xf32, #tpu.memory_space<vmem>>, vector<1x1x16x128xf32>,
    %304 = vector.extract_strided_slice %2 {offsets = [8, 0], sizes = [1, 128], strides = [1, 1]} : vector<16x128xf32> to vector<1x128xf32>
    %305 = vector.broadcast %304 : vector<1x128xf32> to vector<16x128xf32>
    %306 = arith.mulf %305, %2 : vector<16x128xf32>
    %307 = vector.extract_strided_slice %5 {offsets = [8, 0], sizes = [1, 128], strides = [1, 1]} : vector<16x128xf32> to vector<1x128xf32>
    %308 = vector.broadcast %307 : vector<1x128xf32> to vector<16x128xf32>
    %309 = arith.mulf %308, %5 : vector<16x128xf32>
    %310 = arith.addf %306, %309 : vector<16x128xf32>
    %311 = vector.extract_strided_slice %8 {offsets = [8, 0], sizes = [1, 128], strides = [1, 1]} : vector<16x128xf32> to vector<1x128xf32>
    %312 = vector.broadcast %311 : vector<1x128xf32> to vector<16x128xf32>
    %313 = arith.mulf %312, %8 : vector<16x128xf32>
    %314 = arith.addf %310, %313 : vector<16x128xf32>
    %315 = vector.extract_strided_slice %11 {offsets = [8, 0], sizes = [1, 128], strides = [1, 1]} : vector<16x128xf32> to vector<1x128xf32>
    %316 = vector.broadcast %315 : vector<1x128xf32> to vector<16x128xf32>
    %317 = arith.mulf %316, %11 : vector<16x128xf32>
    %318 = arith.addf %314, %317 : vector<16x128xf32>
    %319 = vector.extract_strided_slice %14 {offsets = [8, 0], sizes = [1, 128], strides = [1, 1]} : vector<16x128xf32> to vector<1x128xf32>
    %320 = vector.broadcast %319 : vector<1x128xf32> to vector<16x128xf32>
    %321 = arith.mulf %320, %14 : vector<16x128xf32>
    %322 = arith.addf %318, %321 : vector<16x128xf32>
    %323 = vector.extract_strided_slice %17 {offsets = [8, 0], sizes = [1, 128], strides = [1, 1]} : vector<16x128xf32> to vector<1x128xf32>
    %324 = vector.broadcast %323 : vector<1x128xf32> to vector<16x128xf32>
    %325 = arith.mulf %324, %17 : vector<16x128xf32>
    %326 = arith.addf %322, %325 : vector<16x128xf32>
    %327 = vector.extract_strided_slice %20 {offsets = [8, 0], sizes = [1, 128], strides = [1, 1]} : vector<16x128xf32> to vector<1x128xf32>
    %328 = vector.broadcast %327 : vector<1x128xf32> to vector<16x128xf32>
    %329 = arith.mulf %328, %20 : vector<16x128xf32>
    %330 = arith.addf %326, %329 : vector<16x128xf32>
    %331 = vector.extract_strided_slice %23 {offsets = [8, 0], sizes = [1, 128], strides = [1, 1]} : vector<16x128xf32> to vector<1x128xf32>
    %332 = vector.broadcast %331 : vector<1x128xf32> to vector<16x128xf32>
    %333 = arith.mulf %332, %23 : vector<16x128xf32>
    %334 = arith.addf %330, %333 : vector<16x128xf32>
    %335 = arith.index_cast %c0_i32 : i32 to index
    %c8 = arith.constant 8 : index
    %c0_40 = arith.constant 0 : index
    %c0_41 = arith.constant 0 : index
    %336 = vector.load %arg2[%335, %c8, %c0_40, %c0_41] : memref<1x16x16x128xf32, #tpu.memory_space<vmem>>, vector<1x1x16x128xf32>
    %337 = vector.shape_cast %336 : vector<1x1x16x128xf32> to vector<16x128xf32>
    %338 = vector.shape_cast %334 : vector<16x128xf32> to vector<1x1x16x128xf32>
    tpu.vector_store %arg2[%335, %c8, %c0_40, %c0_41], %338 {strides = array<i32>} : memref<1x16x16x128xf32, #tpu.memory_space<vmem>>, vector<1x1x16x128xf32>,
    %339 = vector.extract_strided_slice %2 {offsets = [9, 0], sizes = [1, 128], strides = [1, 1]} : vector<16x128xf32> to vector<1x128xf32>
    %340 = vector.broadcast %339 : vector<1x128xf32> to vector<16x128xf32>
    %341 = arith.mulf %340, %2 : vector<16x128xf32>
    %342 = vector.extract_strided_slice %5 {offsets = [9, 0], sizes = [1, 128], strides = [1, 1]} : vector<16x128xf32> to vector<1x128xf32>
    %343 = vector.broadcast %342 : vector<1x128xf32> to vector<16x128xf32>
    %344 = arith.mulf %343, %5 : vector<16x128xf32>
    %345 = arith.addf %341, %344 : vector<16x128xf32>
    %346 = vector.extract_strided_slice %8 {offsets = [9, 0], sizes = [1, 128], strides = [1, 1]} : vector<16x128xf32> to vector<1x128xf32>
    %347 = vector.broadcast %346 : vector<1x128xf32> to vector<16x128xf32>
    %348 = arith.mulf %347, %8 : vector<16x128xf32>
    %349 = arith.addf %345, %348 : vector<16x128xf32>
    %350 = vector.extract_strided_slice %11 {offsets = [9, 0], sizes = [1, 128], strides = [1, 1]} : vector<16x128xf32> to vector<1x128xf32>
    %351 = vector.broadcast %350 : vector<1x128xf32> to vector<16x128xf32>
    %352 = arith.mulf %351, %11 : vector<16x128xf32>
    %353 = arith.addf %349, %352 : vector<16x128xf32>
    %354 = vector.extract_strided_slice %14 {offsets = [9, 0], sizes = [1, 128], strides = [1, 1]} : vector<16x128xf32> to vector<1x128xf32>
    %355 = vector.broadcast %354 : vector<1x128xf32> to vector<16x128xf32>
    %356 = arith.mulf %355, %14 : vector<16x128xf32>
    %357 = arith.addf %353, %356 : vector<16x128xf32>
    %358 = vector.extract_strided_slice %17 {offsets = [9, 0], sizes = [1, 128], strides = [1, 1]} : vector<16x128xf32> to vector<1x128xf32>
    %359 = vector.broadcast %358 : vector<1x128xf32> to vector<16x128xf32>
    %360 = arith.mulf %359, %17 : vector<16x128xf32>
    %361 = arith.addf %357, %360 : vector<16x128xf32>
    %362 = vector.extract_strided_slice %20 {offsets = [9, 0], sizes = [1, 128], strides = [1, 1]} : vector<16x128xf32> to vector<1x128xf32>
    %363 = vector.broadcast %362 : vector<1x128xf32> to vector<16x128xf32>
    %364 = arith.mulf %363, %20 : vector<16x128xf32>
    %365 = arith.addf %361, %364 : vector<16x128xf32>
    %366 = vector.extract_strided_slice %23 {offsets = [9, 0], sizes = [1, 128], strides = [1, 1]} : vector<16x128xf32> to vector<1x128xf32>
    %367 = vector.broadcast %366 : vector<1x128xf32> to vector<16x128xf32>
    %368 = arith.mulf %367, %23 : vector<16x128xf32>
    %369 = arith.addf %365, %368 : vector<16x128xf32>
    %370 = arith.index_cast %c0_i32 : i32 to index
    %c9 = arith.constant 9 : index
    %c0_42 = arith.constant 0 : index
    %c0_43 = arith.constant 0 : index
    %371 = vector.load %arg2[%370, %c9, %c0_42, %c0_43] : memref<1x16x16x128xf32, #tpu.memory_space<vmem>>, vector<1x1x16x128xf32>
    %372 = vector.shape_cast %371 : vector<1x1x16x128xf32> to vector<16x128xf32>
    %373 = vector.shape_cast %369 : vector<16x128xf32> to vector<1x1x16x128xf32>
    tpu.vector_store %arg2[%370, %c9, %c0_42, %c0_43], %373 {strides = array<i32>} : memref<1x16x16x128xf32, #tpu.memory_space<vmem>>, vector<1x1x16x128xf32>,
    %374 = vector.extract_strided_slice %2 {offsets = [10, 0], sizes = [1, 128], strides = [1, 1]} : vector<16x128xf32> to vector<1x128xf32>
    %375 = vector.broadcast %374 : vector<1x128xf32> to vector<16x128xf32>
    %376 = arith.mulf %375, %2 : vector<16x128xf32>
    %377 = vector.extract_strided_slice %5 {offsets = [10, 0], sizes = [1, 128], strides = [1, 1]} : vector<16x128xf32> to vector<1x128xf32>
    %378 = vector.broadcast %377 : vector<1x128xf32> to vector<16x128xf32>
    %379 = arith.mulf %378, %5 : vector<16x128xf32>
    %380 = arith.addf %376, %379 : vector<16x128xf32>
    %381 = vector.extract_strided_slice %8 {offsets = [10, 0], sizes = [1, 128], strides = [1, 1]} : vector<16x128xf32> to vector<1x128xf32>
    %382 = vector.broadcast %381 : vector<1x128xf32> to vector<16x128xf32>
    %383 = arith.mulf %382, %8 : vector<16x128xf32>
    %384 = arith.addf %380, %383 : vector<16x128xf32>
    %385 = vector.extract_strided_slice %11 {offsets = [10, 0], sizes = [1, 128], strides = [1, 1]} : vector<16x128xf32> to vector<1x128xf32>
    %386 = vector.broadcast %385 : vector<1x128xf32> to vector<16x128xf32>
    %387 = arith.mulf %386, %11 : vector<16x128xf32>
    %388 = arith.addf %384, %387 : vector<16x128xf32>
    %389 = vector.extract_strided_slice %14 {offsets = [10, 0], sizes = [1, 128], strides = [1, 1]} : vector<16x128xf32> to vector<1x128xf32>
    %390 = vector.broadcast %389 : vector<1x128xf32> to vector<16x128xf32>
    %391 = arith.mulf %390, %14 : vector<16x128xf32>
    %392 = arith.addf %388, %391 : vector<16x128xf32>
    %393 = vector.extract_strided_slice %17 {offsets = [10, 0], sizes = [1, 128], strides = [1, 1]} : vector<16x128xf32> to vector<1x128xf32>
    %394 = vector.broadcast %393 : vector<1x128xf32> to vector<16x128xf32>
    %395 = arith.mulf %394, %17 : vector<16x128xf32>
    %396 = arith.addf %392, %395 : vector<16x128xf32>
    %397 = vector.extract_strided_slice %20 {offsets = [10, 0], sizes = [1, 128], strides = [1, 1]} : vector<16x128xf32> to vector<1x128xf32>
    %398 = vector.broadcast %397 : vector<1x128xf32> to vector<16x128xf32>
    %399 = arith.mulf %398, %20 : vector<16x128xf32>
    %400 = arith.addf %396, %399 : vector<16x128xf32>
    %401 = vector.extract_strided_slice %23 {offsets = [10, 0], sizes = [1, 128], strides = [1, 1]} : vector<16x128xf32> to vector<1x128xf32>
    %402 = vector.broadcast %401 : vector<1x128xf32> to vector<16x128xf32>
    %403 = arith.mulf %402, %23 : vector<16x128xf32>
    %404 = arith.addf %400, %403 : vector<16x128xf32>
    %405 = arith.index_cast %c0_i32 : i32 to index
    %c10 = arith.constant 10 : index
    %c0_44 = arith.constant 0 : index
    %c0_45 = arith.constant 0 : index
    %406 = vector.load %arg2[%405, %c10, %c0_44, %c0_45] : memref<1x16x16x128xf32, #tpu.memory_space<vmem>>, vector<1x1x16x128xf32>
    %407 = vector.shape_cast %406 : vector<1x1x16x128xf32> to vector<16x128xf32>
    %408 = vector.shape_cast %404 : vector<16x128xf32> to vector<1x1x16x128xf32>
    tpu.vector_store %arg2[%405, %c10, %c0_44, %c0_45], %408 {strides = array<i32>} : memref<1x16x16x128xf32, #tpu.memory_space<vmem>>, vector<1x1x16x128xf32>,
    %409 = vector.extract_strided_slice %2 {offsets = [11, 0], sizes = [1, 128], strides = [1, 1]} : vector<16x128xf32> to vector<1x128xf32>
    %410 = vector.broadcast %409 : vector<1x128xf32> to vector<16x128xf32>
    %411 = arith.mulf %410, %2 : vector<16x128xf32>
    %412 = vector.extract_strided_slice %5 {offsets = [11, 0], sizes = [1, 128], strides = [1, 1]} : vector<16x128xf32> to vector<1x128xf32>
    %413 = vector.broadcast %412 : vector<1x128xf32> to vector<16x128xf32>
    %414 = arith.mulf %413, %5 : vector<16x128xf32>
    %415 = arith.addf %411, %414 : vector<16x128xf32>
    %416 = vector.extract_strided_slice %8 {offsets = [11, 0], sizes = [1, 128], strides = [1, 1]} : vector<16x128xf32> to vector<1x128xf32>
    %417 = vector.broadcast %416 : vector<1x128xf32> to vector<16x128xf32>
    %418 = arith.mulf %417, %8 : vector<16x128xf32>
    %419 = arith.addf %415, %418 : vector<16x128xf32>
    %420 = vector.extract_strided_slice %11 {offsets = [11, 0], sizes = [1, 128], strides = [1, 1]} : vector<16x128xf32> to vector<1x128xf32>
    %421 = vector.broadcast %420 : vector<1x128xf32> to vector<16x128xf32>
    %422 = arith.mulf %421, %11 : vector<16x128xf32>
    %423 = arith.addf %419, %422 : vector<16x128xf32>
    %424 = vector.extract_strided_slice %14 {offsets = [11, 0], sizes = [1, 128], strides = [1, 1]} : vector<16x128xf32> to vector<1x128xf32>
    %425 = vector.broadcast %424 : vector<1x128xf32> to vector<16x128xf32>
    %426 = arith.mulf %425, %14 : vector<16x128xf32>
    %427 = arith.addf %423, %426 : vector<16x128xf32>
    %428 = vector.extract_strided_slice %17 {offsets = [11, 0], sizes = [1, 128], strides = [1, 1]} : vector<16x128xf32> to vector<1x128xf32>
    %429 = vector.broadcast %428 : vector<1x128xf32> to vector<16x128xf32>
    %430 = arith.mulf %429, %17 : vector<16x128xf32>
    %431 = arith.addf %427, %430 : vector<16x128xf32>
    %432 = vector.extract_strided_slice %20 {offsets = [11, 0], sizes = [1, 128], strides = [1, 1]} : vector<16x128xf32> to vector<1x128xf32>
    %433 = vector.broadcast %432 : vector<1x128xf32> to vector<16x128xf32>
    %434 = arith.mulf %433, %20 : vector<16x128xf32>
    %435 = arith.addf %431, %434 : vector<16x128xf32>
    %436 = vector.extract_strided_slice %23 {offsets = [11, 0], sizes = [1, 128], strides = [1, 1]} : vector<16x128xf32> to vector<1x128xf32>
    %437 = vector.broadcast %436 : vector<1x128xf32> to vector<16x128xf32>
    %438 = arith.mulf %437, %23 : vector<16x128xf32>
    %439 = arith.addf %435, %438 : vector<16x128xf32>
    %440 = arith.index_cast %c0_i32 : i32 to index
    %c11 = arith.constant 11 : index
    %c0_46 = arith.constant 0 : index
    %c0_47 = arith.constant 0 : index
    %441 = vector.load %arg2[%440, %c11, %c0_46, %c0_47] : memref<1x16x16x128xf32, #tpu.memory_space<vmem>>, vector<1x1x16x128xf32>
    %442 = vector.shape_cast %441 : vector<1x1x16x128xf32> to vector<16x128xf32>
    %443 = vector.shape_cast %439 : vector<16x128xf32> to vector<1x1x16x128xf32>
    tpu.vector_store %arg2[%440, %c11, %c0_46, %c0_47], %443 {strides = array<i32>} : memref<1x16x16x128xf32, #tpu.memory_space<vmem>>, vector<1x1x16x128xf32>,
    %444 = vector.extract_strided_slice %2 {offsets = [12, 0], sizes = [1, 128], strides = [1, 1]} : vector<16x128xf32> to vector<1x128xf32>
    %445 = vector.broadcast %444 : vector<1x128xf32> to vector<16x128xf32>
    %446 = arith.mulf %445, %2 : vector<16x128xf32>
    %447 = vector.extract_strided_slice %5 {offsets = [12, 0], sizes = [1, 128], strides = [1, 1]} : vector<16x128xf32> to vector<1x128xf32>
    %448 = vector.broadcast %447 : vector<1x128xf32> to vector<16x128xf32>
    %449 = arith.mulf %448, %5 : vector<16x128xf32>
    %450 = arith.addf %446, %449 : vector<16x128xf32>
    %451 = vector.extract_strided_slice %8 {offsets = [12, 0], sizes = [1, 128], strides = [1, 1]} : vector<16x128xf32> to vector<1x128xf32>
    %452 = vector.broadcast %451 : vector<1x128xf32> to vector<16x128xf32>
    %453 = arith.mulf %452, %8 : vector<16x128xf32>
    %454 = arith.addf %450, %453 : vector<16x128xf32>
    %455 = vector.extract_strided_slice %11 {offsets = [12, 0], sizes = [1, 128], strides = [1, 1]} : vector<16x128xf32> to vector<1x128xf32>
    %456 = vector.broadcast %455 : vector<1x128xf32> to vector<16x128xf32>
    %457 = arith.mulf %456, %11 : vector<16x128xf32>
    %458 = arith.addf %454, %457 : vector<16x128xf32>
    %459 = vector.extract_strided_slice %14 {offsets = [12, 0], sizes = [1, 128], strides = [1, 1]} : vector<16x128xf32> to vector<1x128xf32>
    %460 = vector.broadcast %459 : vector<1x128xf32> to vector<16x128xf32>
    %461 = arith.mulf %460, %14 : vector<16x128xf32>
    %462 = arith.addf %458, %461 : vector<16x128xf32>
    %463 = vector.extract_strided_slice %17 {offsets = [12, 0], sizes = [1, 128], strides = [1, 1]} : vector<16x128xf32> to vector<1x128xf32>
    %464 = vector.broadcast %463 : vector<1x128xf32> to vector<16x128xf32>
    %465 = arith.mulf %464, %17 : vector<16x128xf32>
    %466 = arith.addf %462, %465 : vector<16x128xf32>
    %467 = vector.extract_strided_slice %20 {offsets = [12, 0], sizes = [1, 128], strides = [1, 1]} : vector<16x128xf32> to vector<1x128xf32>
    %468 = vector.broadcast %467 : vector<1x128xf32> to vector<16x128xf32>
    %469 = arith.mulf %468, %20 : vector<16x128xf32>
    %470 = arith.addf %466, %469 : vector<16x128xf32>
    %471 = vector.extract_strided_slice %23 {offsets = [12, 0], sizes = [1, 128], strides = [1, 1]} : vector<16x128xf32> to vector<1x128xf32>
    %472 = vector.broadcast %471 : vector<1x128xf32> to vector<16x128xf32>
    %473 = arith.mulf %472, %23 : vector<16x128xf32>
    %474 = arith.addf %470, %473 : vector<16x128xf32>
    %475 = arith.index_cast %c0_i32 : i32 to index
    %c12 = arith.constant 12 : index
    %c0_48 = arith.constant 0 : index
    %c0_49 = arith.constant 0 : index
    %476 = vector.load %arg2[%475, %c12, %c0_48, %c0_49] : memref<1x16x16x128xf32, #tpu.memory_space<vmem>>, vector<1x1x16x128xf32>
    %477 = vector.shape_cast %476 : vector<1x1x16x128xf32> to vector<16x128xf32>
    %478 = vector.shape_cast %474 : vector<16x128xf32> to vector<1x1x16x128xf32>
    tpu.vector_store %arg2[%475, %c12, %c0_48, %c0_49], %478 {strides = array<i32>} : memref<1x16x16x128xf32, #tpu.memory_space<vmem>>, vector<1x1x16x128xf32>,
    %479 = vector.extract_strided_slice %2 {offsets = [13, 0], sizes = [1, 128], strides = [1, 1]} : vector<16x128xf32> to vector<1x128xf32>
    %480 = vector.broadcast %479 : vector<1x128xf32> to vector<16x128xf32>
    %481 = arith.mulf %480, %2 : vector<16x128xf32>
    %482 = vector.extract_strided_slice %5 {offsets = [13, 0], sizes = [1, 128], strides = [1, 1]} : vector<16x128xf32> to vector<1x128xf32>
    %483 = vector.broadcast %482 : vector<1x128xf32> to vector<16x128xf32>
    %484 = arith.mulf %483, %5 : vector<16x128xf32>
    %485 = arith.addf %481, %484 : vector<16x128xf32>
    %486 = vector.extract_strided_slice %8 {offsets = [13, 0], sizes = [1, 128], strides = [1, 1]} : vector<16x128xf32> to vector<1x128xf32>
    %487 = vector.broadcast %486 : vector<1x128xf32> to vector<16x128xf32>
    %488 = arith.mulf %487, %8 : vector<16x128xf32>
    %489 = arith.addf %485, %488 : vector<16x128xf32>
    %490 = vector.extract_strided_slice %11 {offsets = [13, 0], sizes = [1, 128], strides = [1, 1]} : vector<16x128xf32> to vector<1x128xf32>
    %491 = vector.broadcast %490 : vector<1x128xf32> to vector<16x128xf32>
    %492 = arith.mulf %491, %11 : vector<16x128xf32>
    %493 = arith.addf %489, %492 : vector<16x128xf32>
    %494 = vector.extract_strided_slice %14 {offsets = [13, 0], sizes = [1, 128], strides = [1, 1]} : vector<16x128xf32> to vector<1x128xf32>
    %495 = vector.broadcast %494 : vector<1x128xf32> to vector<16x128xf32>
    %496 = arith.mulf %495, %14 : vector<16x128xf32>
    %497 = arith.addf %493, %496 : vector<16x128xf32>
    %498 = vector.extract_strided_slice %17 {offsets = [13, 0], sizes = [1, 128], strides = [1, 1]} : vector<16x128xf32> to vector<1x128xf32>
    %499 = vector.broadcast %498 : vector<1x128xf32> to vector<16x128xf32>
    %500 = arith.mulf %499, %17 : vector<16x128xf32>
    %501 = arith.addf %497, %500 : vector<16x128xf32>
    %502 = vector.extract_strided_slice %20 {offsets = [13, 0], sizes = [1, 128], strides = [1, 1]} : vector<16x128xf32> to vector<1x128xf32>
    %503 = vector.broadcast %502 : vector<1x128xf32> to vector<16x128xf32>
    %504 = arith.mulf %503, %20 : vector<16x128xf32>
    %505 = arith.addf %501, %504 : vector<16x128xf32>
    %506 = vector.extract_strided_slice %23 {offsets = [13, 0], sizes = [1, 128], strides = [1, 1]} : vector<16x128xf32> to vector<1x128xf32>
    %507 = vector.broadcast %506 : vector<1x128xf32> to vector<16x128xf32>
    %508 = arith.mulf %507, %23 : vector<16x128xf32>
    %509 = arith.addf %505, %508 : vector<16x128xf32>
    %510 = arith.index_cast %c0_i32 : i32 to index
    %c13 = arith.constant 13 : index
    %c0_50 = arith.constant 0 : index
    %c0_51 = arith.constant 0 : index
    %511 = vector.load %arg2[%510, %c13, %c0_50, %c0_51] : memref<1x16x16x128xf32, #tpu.memory_space<vmem>>, vector<1x1x16x128xf32>
    %512 = vector.shape_cast %511 : vector<1x1x16x128xf32> to vector<16x128xf32>
    %513 = vector.shape_cast %509 : vector<16x128xf32> to vector<1x1x16x128xf32>
    tpu.vector_store %arg2[%510, %c13, %c0_50, %c0_51], %513 {strides = array<i32>} : memref<1x16x16x128xf32, #tpu.memory_space<vmem>>, vector<1x1x16x128xf32>,
    %514 = vector.extract_strided_slice %2 {offsets = [14, 0], sizes = [1, 128], strides = [1, 1]} : vector<16x128xf32> to vector<1x128xf32>
    %515 = vector.broadcast %514 : vector<1x128xf32> to vector<16x128xf32>
    %516 = arith.mulf %515, %2 : vector<16x128xf32>
    %517 = vector.extract_strided_slice %5 {offsets = [14, 0], sizes = [1, 128], strides = [1, 1]} : vector<16x128xf32> to vector<1x128xf32>
    %518 = vector.broadcast %517 : vector<1x128xf32> to vector<16x128xf32>
    %519 = arith.mulf %518, %5 : vector<16x128xf32>
    %520 = arith.addf %516, %519 : vector<16x128xf32>
    %521 = vector.extract_strided_slice %8 {offsets = [14, 0], sizes = [1, 128], strides = [1, 1]} : vector<16x128xf32> to vector<1x128xf32>
    %522 = vector.broadcast %521 : vector<1x128xf32> to vector<16x128xf32>
    %523 = arith.mulf %522, %8 : vector<16x128xf32>
    %524 = arith.addf %520, %523 : vector<16x128xf32>
    %525 = vector.extract_strided_slice %11 {offsets = [14, 0], sizes = [1, 128], strides = [1, 1]} : vector<16x128xf32> to vector<1x128xf32>
    %526 = vector.broadcast %525 : vector<1x128xf32> to vector<16x128xf32>
    %527 = arith.mulf %526, %11 : vector<16x128xf32>
    %528 = arith.addf %524, %527 : vector<16x128xf32>
    %529 = vector.extract_strided_slice %14 {offsets = [14, 0], sizes = [1, 128], strides = [1, 1]} : vector<16x128xf32> to vector<1x128xf32>
    %530 = vector.broadcast %529 : vector<1x128xf32> to vector<16x128xf32>
    %531 = arith.mulf %530, %14 : vector<16x128xf32>
    %532 = arith.addf %528, %531 : vector<16x128xf32>
    %533 = vector.extract_strided_slice %17 {offsets = [14, 0], sizes = [1, 128], strides = [1, 1]} : vector<16x128xf32> to vector<1x128xf32>
    %534 = vector.broadcast %533 : vector<1x128xf32> to vector<16x128xf32>
    %535 = arith.mulf %534, %17 : vector<16x128xf32>
    %536 = arith.addf %532, %535 : vector<16x128xf32>
    %537 = vector.extract_strided_slice %20 {offsets = [14, 0], sizes = [1, 128], strides = [1, 1]} : vector<16x128xf32> to vector<1x128xf32>
    %538 = vector.broadcast %537 : vector<1x128xf32> to vector<16x128xf32>
    %539 = arith.mulf %538, %20 : vector<16x128xf32>
    %540 = arith.addf %536, %539 : vector<16x128xf32>
    %541 = vector.extract_strided_slice %23 {offsets = [14, 0], sizes = [1, 128], strides = [1, 1]} : vector<16x128xf32> to vector<1x128xf32>
    %542 = vector.broadcast %541 : vector<1x128xf32> to vector<16x128xf32>
    %543 = arith.mulf %542, %23 : vector<16x128xf32>
    %544 = arith.addf %540, %543 : vector<16x128xf32>
    %545 = arith.index_cast %c0_i32 : i32 to index
    %c14 = arith.constant 14 : index
    %c0_52 = arith.constant 0 : index
    %c0_53 = arith.constant 0 : index
    %546 = vector.load %arg2[%545, %c14, %c0_52, %c0_53] : memref<1x16x16x128xf32, #tpu.memory_space<vmem>>, vector<1x1x16x128xf32>
    %547 = vector.shape_cast %546 : vector<1x1x16x128xf32> to vector<16x128xf32>
    %548 = vector.shape_cast %544 : vector<16x128xf32> to vector<1x1x16x128xf32>
    tpu.vector_store %arg2[%545, %c14, %c0_52, %c0_53], %548 {strides = array<i32>} : memref<1x16x16x128xf32, #tpu.memory_space<vmem>>, vector<1x1x16x128xf32>,
    %549 = vector.extract_strided_slice %2 {offsets = [15, 0], sizes = [1, 128], strides = [1, 1]} : vector<16x128xf32> to vector<1x128xf32>
    %550 = vector.broadcast %549 : vector<1x128xf32> to vector<16x128xf32>
    %551 = arith.mulf %550, %2 : vector<16x128xf32>
    %552 = vector.extract_strided_slice %5 {offsets = [15, 0], sizes = [1, 128], strides = [1, 1]} : vector<16x128xf32> to vector<1x128xf32>
    %553 = vector.broadcast %552 : vector<1x128xf32> to vector<16x128xf32>
    %554 = arith.mulf %553, %5 : vector<16x128xf32>
    %555 = arith.addf %551, %554 : vector<16x128xf32>
    %556 = vector.extract_strided_slice %8 {offsets = [15, 0], sizes = [1, 128], strides = [1, 1]} : vector<16x128xf32> to vector<1x128xf32>
    %557 = vector.broadcast %556 : vector<1x128xf32> to vector<16x128xf32>
    %558 = arith.mulf %557, %8 : vector<16x128xf32>
    %559 = arith.addf %555, %558 : vector<16x128xf32>
    %560 = vector.extract_strided_slice %11 {offsets = [15, 0], sizes = [1, 128], strides = [1, 1]} : vector<16x128xf32> to vector<1x128xf32>
    %561 = vector.broadcast %560 : vector<1x128xf32> to vector<16x128xf32>
    %562 = arith.mulf %561, %11 : vector<16x128xf32>
    %563 = arith.addf %559, %562 : vector<16x128xf32>
    %564 = vector.extract_strided_slice %14 {offsets = [15, 0], sizes = [1, 128], strides = [1, 1]} : vector<16x128xf32> to vector<1x128xf32>
    %565 = vector.broadcast %564 : vector<1x128xf32> to vector<16x128xf32>
    %566 = arith.mulf %565, %14 : vector<16x128xf32>
    %567 = arith.addf %563, %566 : vector<16x128xf32>
    %568 = vector.extract_strided_slice %17 {offsets = [15, 0], sizes = [1, 128], strides = [1, 1]} : vector<16x128xf32> to vector<1x128xf32>
    %569 = vector.broadcast %568 : vector<1x128xf32> to vector<16x128xf32>
    %570 = arith.mulf %569, %17 : vector<16x128xf32>
    %571 = arith.addf %567, %570 : vector<16x128xf32>
    %572 = vector.extract_strided_slice %20 {offsets = [15, 0], sizes = [1, 128], strides = [1, 1]} : vector<16x128xf32> to vector<1x128xf32>
    %573 = vector.broadcast %572 : vector<1x128xf32> to vector<16x128xf32>
    %574 = arith.mulf %573, %20 : vector<16x128xf32>
    %575 = arith.addf %571, %574 : vector<16x128xf32>
    %576 = vector.extract_strided_slice %23 {offsets = [15, 0], sizes = [1, 128], strides = [1, 1]} : vector<16x128xf32> to vector<1x128xf32>
    %577 = vector.broadcast %576 : vector<1x128xf32> to vector<16x128xf32>
    %578 = arith.mulf %577, %23 : vector<16x128xf32>
    %579 = arith.addf %575, %578 : vector<16x128xf32>
    %580 = arith.index_cast %c0_i32 : i32 to index
    %c15 = arith.constant 15 : index
    %c0_54 = arith.constant 0 : index
    %c0_55 = arith.constant 0 : index
    %581 = vector.load %arg2[%580, %c15, %c0_54, %c0_55] : memref<1x16x16x128xf32, #tpu.memory_space<vmem>>, vector<1x1x16x128xf32>
    %582 = vector.shape_cast %581 : vector<1x1x16x128xf32> to vector<16x128xf32>
    %583 = vector.shape_cast %579 : vector<16x128xf32> to vector<1x1x16x128xf32>
    tpu.vector_store %arg2[%580, %c15, %c0_54, %c0_55], %583 {strides = array<i32>} : memref<1x16x16x128xf32, #tpu.memory_space<vmem>>, vector<1x1x16x128xf32>,
    %c1_i32 = arith.constant 1 : i32
    return
  }
  func.func @transform_0(%arg0: i32) -> (i32, i32, i32, i32) {
    %c0_i32 = arith.constant 0 : i32
    %c0_i32_0 = arith.constant 0 : i32
    %c0_i32_1 = arith.constant 0 : i32
    %c0_i32_2 = arith.constant 0 : i32
    return %arg0, %c0_i32, %c0_i32_0, %c0_i32_1 : i32, i32, i32, i32
  }
  func.func @transform_1(%arg0: i32) -> (i32, i32, i32, i32) {
    %c0_i32 = arith.constant 0 : i32
    %c0_i32_0 = arith.constant 0 : i32
    %c0_i32_1 = arith.constant 0 : i32
    %c0_i32_2 = arith.constant 0 : i32
    return %arg0, %c0_i32, %c0_i32_0, %c0_i32_1 : i32, i32, i32, i32
  }
}

</mosaic_0001>

<bundles_post_ra>
// kernel: projmap.1
= control target key start
LH: loop header
LB: loop body
LE: loop exit
PB: predicated region body
PF: predicated region fallthrough
CT: control target
= control target key end

     0   :  { %v31_v0 = vlaneseq  ;;  %s1946_s0 = inlined_call_operand.vmem [shape: f32[1,8,16,128], index: 0, kind: input, shape index: {}]   ;;  %s1947_s1 = inlined_call_operand.vmem [shape: f32[1,16,16,128], index: 1, kind: output, shape index: {}]  }
   0x1   :  { %v1147_v1 = vld [vmem:[%s1946_s0] sm:$0xff]  ;;  %v1152_v2 = vld [vmem:[%s1946_s0 + $0x10] sm:$0xff]  ;;  %v1227_v30 = vld [vmem:[%s1946_s0 + $0x8] sm:$0xff] }
   0x2   :  { %v1154_v3 = vshrl.u32 %v31_v0, 7  ;;  %v1159_v4 = vld [vmem:[%s1946_s0 + $0x20] sm:$0xff]  ;;  %v1164_v5 = vld [vmem:[%s1946_s0 + $0x30] sm:$0xff]  ;;  %v1232_v31 = vld [vmem:[%s1946_s0 + $0x18] sm:$0xff] }
   0x3   :  { %v1169_v6 = vld [vmem:[%s1946_s0 + $0x40] sm:$0xff]  ;;  %v1174_v7 = vld [vmem:[%s1946_s0 + $0x50] sm:$0xff]  ;;  %v1237_v32 = vld [vmem:[%s1946_s0 + $0x28] sm:$0xff] }
   0x4   :  { %v1179_v8 = vld [vmem:[%s1946_s0 + $0x60] sm:$0xff]  ;;  %v1184_v9 = vld [vmem:[%s1946_s0 + $0x70] sm:$0xff]  ;;  %v1187_v10 = vsub.s32 0, %v1154_v3  ;;  %v1190_v11 = vsub.s32 1, %v1154_v3  ;;  %v1193_v12 = vsub.s32 2, %v1154_v3  ;;  %v1196_v13 = vsub.s32 3, %v1154_v3 }
   0x5   :  { %v1218_v25 = vsub.s32 4, %v1154_v3  ;;  %v1242_v34 = vld [vmem:[%s1946_s0 + $0x38] sm:$0xff]  ;;  %v1247_v35 = vld [vmem:[%s1946_s0 + $0x48] sm:$0xff] }
   0x6   :  { %v34_v14 = vrot.slane %v1147_v1, %v1187_v10  ;;  %v40_v15 = vrot.slane %v1152_v2, %v1187_v10  ;;  %v48_v16 = vrot.slane %v1159_v4, %v1187_v10  ;;  %v56_v17 = vrot.slane %v1164_v5, %v1187_v10  ;;  %v1252_v36 = vld [vmem:[%s1946_s0 + $0x58] sm:$0xff]  ;;  %v1261_v41 = vld [vmem:[%s1946_s0 + $0x68] sm:$0xff] }
   0x7   :  { %v64_v18 = vrot.slane %v1169_v6, %v1187_v10  ;;  %v72_v19 = vrot.slane %v1174_v7, %v1187_v10  ;;  %v80_v20 = vrot.slane %v1179_v8, %v1187_v10  ;;  %v88_v21 = vrot.slane %v1184_v9, %v1187_v10  ;;  %v1280_v54 = vld [vmem:[%s1946_s0 + $0x78] sm:$0xff] }
   0x8   :  { %v35_v22 = vmul.f32 %v34_v14, %v1147_v1  ;;  %v41_v23 = vmul.f32 %v1152_v2, %v40_v15  ;;  %v49_v24 = vmul.f32 %v1159_v4, %v48_v16  ;;  %v57_v26 = vmul.f32 %v1164_v5, %v56_v17 }
   0x9   :  { %v65_v27 = vmul.f32 %v1169_v6, %v64_v18  ;;  %v73_v28 = vmul.f32 %v1174_v7, %v72_v19  ;;  %v81_v29 = vmul.f32 %v1179_v8, %v80_v20  ;;  %v36_v37 = vmul.f32 %v34_v14, %v1227_v30 }
   0xa   :  { %v43_v33 = vadd.f32 %v41_v23, %v35_v22  ;;  %v42_v38 = vmul.f32 %v1232_v31, %v40_v15  ;;  %v50_v39 = vmul.f32 %v1237_v32, %v48_v16  ;;  %v89_v40 = vmul.f32 %v1184_v9, %v88_v21 }
   0xb   :  { %v58_v42 = vmul.f32 %v1242_v34, %v56_v17  ;;  %v66_v43 = vmul.f32 %v1247_v35, %v64_v18  ;;  %v74_v44 = vmul.f32 %v1252_v36, %v72_v19  ;;  %v82_v47 = vmul.f32 %v1261_v41, %v80_v20 }
   0xc   :  { %v51_v45 = vadd.f32 %v49_v24, %v43_v33  ;;  %v44_v46 = vadd.f32 %v42_v38, %v36_v37  ;;  %v98_v48 = vrot.slane %v1147_v1, %v1190_v11  ;;  %v104_v49 = vrot.slane %v1152_v2, %v1190_v11 }
   0xd   :  { %v112_v50 = vrot.slane %v1159_v4, %v1190_v11  ;;  %v120_v51 = vrot.slane %v1164_v5, %v1190_v11  ;;  %v128_v52 = vrot.slane %v1169_v6, %v1190_v11  ;;  %v136_v57 = vrot.slane %v1174_v7, %v1190_v11 }
   0xe   :  { %v59_v53 = vadd.f32 %v57_v26, %v51_v45  ;;  %v52_v55 = vadd.f32 %v50_v39, %v44_v46  ;;  %v99_v56 = vmul.f32 %v98_v48, %v1147_v1  ;;  %v90_v58 = vmul.f32 %v1280_v54, %v88_v21 }
   0xf   :  { %v105_v59 = vmul.f32 %v1152_v2, %v104_v49  ;;  %v113_v60 = vmul.f32 %v1159_v4, %v112_v50  ;;  %v121_v61 = vmul.f32 %v1164_v5, %v120_v51  ;;  %v129_v0 = vmul.f32 %v1169_v6, %v128_v52 }
  0x10   :  { %v67_v62 = vadd.f32 %v65_v27, %v59_v53  ;;  %v60_v63 = vadd.f32 %v58_v42, %v52_v55  ;;  %v144_v14 = vrot.slane %v1179_v8, %v1190_v11  ;;  %v152_v16 = vrot.slane %v1184_v9, %v1190_v11 }
  0x11   :  { %v107_v15 = vadd.f32 %v105_v59, %v99_v56  ;;  %v100_v17 = vmul.f32 %v98_v48, %v1227_v30  ;;  %v106_v18 = vmul.f32 %v1232_v31, %v104_v49  ;;  %v137_v21 = vmul.f32 %v1174_v7, %v136_v57 }
  0x12   :  { %v75_v19 = vadd.f32 %v73_v28, %v67_v62  ;;  %v68_v20 = vadd.f32 %v66_v43, %v60_v63  ;;  %v114_v22 = vmul.f32 %v1237_v32, %v112_v50  ;;  %v145_v24 = vmul.f32 %v1179_v8, %v144_v14 }
  0x13   :  { %v115_v23 = vadd.f32 %v113_v60, %v107_v15  ;;  %v108_v26 = vadd.f32 %v106_v18, %v100_v17  ;;  %v122_v27 = vmul.f32 %v1242_v34, %v120_v51  ;;  %v153_v38 = vmul.f32 %v1184_v9, %v152_v16 }
  0x14   :  { %v83_v33 = vadd.f32 %v81_v29, %v75_v19  ;;  %v76_v37 = vadd.f32 %v74_v44, %v68_v20  ;;  %v130_v39 = vmul.f32 %v1247_v35, %v128_v52  ;;  %v138_v28 = vmul.f32 %v1252_v36, %v136_v57 }
  0x15   :  { %v123_v42 = vadd.f32 %v121_v61, %v115_v23  ;;  %v116_v45 = vadd.f32 %v114_v22, %v108_v26  ;;  %v146_v43 = vmul.f32 %v1261_v41, %v144_v14  ;;  %v163_v49 = vrot.slane %v1147_v1, %v1193_v12 }
  0x16   :  { %v91_v46 = vadd.f32 %v89_v40, %v83_v33  ;;  %v84_v48 = vadd.f32 %v82_v47, %v76_v37  ;;  %v169_v50 = vrot.slane %v1152_v2, %v1193_v12  ;;  %v177_v51 = vrot.slane %v1159_v4, %v1193_v12 }
  0x17   :  { %v131_v29 = vadd.f32 %v129_v0, %v123_v42  ;;  %v124_v44 = vadd.f32 %v122_v27, %v116_v45  ;;  %v185_v52 = vrot.slane %v1164_v5, %v1193_v12  ;;  %v164_v47 = vmul.f32 %v163_v49, %v1147_v1 }
  0x18   :  { %93 = vst [vmem:[%s1947_s1] sm:$0xff] %v91_v46  ;;  %v92_v40 = vadd.f32 %v90_v58, %v84_v48  ;;  %v170_v53 = vmul.f32 %v1152_v2, %v169_v50  ;;  %v193_v55 = vrot.slane %v1169_v6, %v1193_v12  ;;  %v154_v59 = vmul.f32 %v1280_v54, %v152_v16 }
  0x19   :  { %v139_v56 = vadd.f32 %v137_v21, %v131_v29  ;;  %v132_v57 = vadd.f32 %v130_v39, %v124_v44  ;;  %v178_v60 = vmul.f32 %v1159_v4, %v177_v51  ;;  %v186_v58 = vmul.f32 %v1164_v5, %v185_v52 }
  0x1a   :  { %94 = vst [vmem:[%s1947_s1 + $0x8] sm:$0xff] %v92_v40  ;;  %v172_v61 = vadd.f32 %v170_v53, %v164_v47  ;;  %v201_v62 = vrot.slane %v1174_v7, %v1193_v12  ;;  %v209_v63 = vrot.slane %v1179_v8, %v1193_v12  ;;  %v217_v15 = vrot.slane %v1184_v9, %v1193_v12 }
  0x1b   :  { %v147_v0 = vadd.f32 %v145_v24, %v139_v56  ;;  %v140_v14 = vadd.f32 %v138_v28, %v132_v57  ;;  %v165_v16 = vmul.f32 %v163_v49, %v1227_v30  ;;  %v194_v18 = vmul.f32 %v1169_v6, %v193_v55 }
  0x1c   :  { %v180_v17 = vadd.f32 %v178_v60, %v172_v61  ;;  %v171_v19 = vmul.f32 %v1232_v31, %v169_v50  ;;  %v1335_v20 = vsub.s32 5, %v1154_v3  ;;  %v202_v23 = vmul.f32 %v1174_v7, %v201_v62 }
  0x1d   :  { %v155_v21 = vadd.f32 %v153_v38, %v147_v0  ;;  %v148_v22 = vadd.f32 %v146_v43, %v140_v14  ;;  %v179_v24 = vmul.f32 %v1237_v32, %v177_v51  ;;  %v210_v27 = vmul.f32 %v1179_v8, %v209_v63 }
  0x1e   :  { %v188_v26 = vadd.f32 %v186_v58, %v180_v17  ;;  %v173_v33 = vadd.f32 %v171_v19, %v165_v16  ;;  %v187_v37 = vmul.f32 %v1242_v34, %v185_v52  ;;  %v218_v42 = vmul.f32 %v1184_v9, %v217_v15 }
  0x1f   :  { %1088 = vst [vmem:[%s1947_s1 + $0x10] sm:$0xff] %v155_v21  ;;  %v156_v39 = vadd.f32 %v154_v59, %v148_v22  ;;  %v195_v38 = vmul.f32 %v1247_v35, %v193_v55  ;;  %v203_v45 = vmul.f32 %v1252_v36, %v201_v62  ;;  %v228_v46 = vrot.slane %v1147_v1, %v1196_v13 }
  0x20   :  { %v196_v28 = vadd.f32 %v194_v18, %v188_v26  ;;  %v181_v43 = vadd.f32 %v179_v24, %v173_v33  ;;  %v234_v48 = vrot.slane %v1152_v2, %v1196_v13  ;;  %v211_v49 = vmul.f32 %v1261_v41, %v209_v63 }
  0x21   :  { %1089 = vst [vmem:[%s1947_s1 + $0x18] sm:$0xff] %v156_v39  ;;  %v242_v50 = vrot.slane %v1159_v4, %v1196_v13  ;;  %v250_v29 = vrot.slane %v1164_v5, %v1196_v13  ;;  %v258_v44 = vrot.slane %v1169_v6, %v1196_v13  ;;  %v229_v40 = vmul.f32 %v228_v46, %v1147_v1 }
  0x22   :  { %v204_v51 = vadd.f32 %v202_v23, %v196_v28  ;;  %v189_v52 = vadd.f32 %v187_v37, %v181_v43  ;;  %v235_v47 = vmul.f32 %v1152_v2, %v234_v48  ;;  %v219_v53 = vmul.f32 %v1280_v54, %v217_v15 }
  0x23   :  { %v243_v55 = vmul.f32 %v1159_v4, %v242_v50  ;;  %v251_v56 = vmul.f32 %v1164_v5, %v250_v29  ;;  %v266_v57 = vrot.slane %v1174_v7, %v1196_v13  ;;  %v274_v58 = vrot.slane %v1179_v8, %v1196_v13 }
  0x24   :  { %v212_v59 = vadd.f32 %v210_v27, %v204_v51  ;;  %v197_v60 = vadd.f32 %v195_v38, %v189_v52  ;;  %v237_v61 = vadd.f32 %v235_v47, %v229_v40  ;;  %v282_v62 = vrot.slane %v1184_v9, %v1196_v13 }
  0x25   :  { %v230_v63 = vmul.f32 %v228_v46, %v1227_v30  ;;  %v236_v0 = vmul.f32 %v1232_v31, %v234_v48  ;;  %v244_v14 = vmul.f32 %v1237_v32, %v242_v50  ;;  %v259_v18 = vmul.f32 %v1169_v6, %v258_v44 }
  0x26   :  { %v220_v15 = vadd.f32 %v218_v42, %v212_v59  ;;  %v205_v16 = vadd.f32 %v203_v45, %v197_v60  ;;  %v245_v17 = vadd.f32 %v243_v55, %v237_v61  ;;  %v267_v19 = vmul.f32 %v1174_v7, %v266_v57 }
  0x27   :  { %v275_v21 = vmul.f32 %v1179_v8, %v274_v58  ;;  %v238_v22 = vadd.f32 %v236_v0, %v230_v63  ;;  %v252_v23 = vmul.f32 %v1242_v34, %v250_v29  ;;  %v283_v27 = vmul.f32 %v1184_v9, %v282_v62 }
  0x28   :  { %1090 = vst [vmem:[%s1947_s1 + $0x20] sm:$0xff] %v220_v15  ;;  %v213_v24 = vadd.f32 %v211_v49, %v205_v16  ;;  %v253_v26 = vadd.f32 %v251_v56, %v245_v17  ;;  %v260_v33 = vmul.f32 %v1247_v35, %v258_v44  ;;  %v268_v39 = vmul.f32 %v1252_v36, %v266_v57 }
  0x29   :  { %v246_v37 = vadd.f32 %v244_v14, %v238_v22  ;;  %v293_v42 = vrot.slane %v1147_v1, %v1218_v25  ;;  %v299_v38 = vrot.slane %v1152_v2, %v1218_v25  ;;  %v307_v43 = vrot.slane %v1159_v4, %v1218_v25 }
  0x2a   :  { %v221_v45 = vadd.f32 %v219_v53, %v213_v24  ;;  %v261_v28 = vadd.f32 %v259_v18, %v253_v26  ;;  %v315_v46 = vrot.slane %v1164_v5, %v1218_v25  ;;  %v323_v29 = vrot.slane %v1169_v6, %v1218_v25 }
  0x2b   :  { %v254_v48 = vadd.f32 %v252_v23, %v246_v37  ;;  %v294_v49 = vmul.f32 %v293_v42, %v1147_v1  ;;  %v300_v50 = vmul.f32 %v1152_v2, %v299_v38  ;;  %v276_v51 = vmul.f32 %v1261_v41, %v274_v58 }
  0x2c   :  { %1091 = vst [vmem:[%s1947_s1 + $0x28] sm:$0xff] %v221_v45  ;;  %v269_v44 = vadd.f32 %v267_v19, %v261_v28  ;;  %v308_v52 = vmul.f32 %v1159_v4, %v307_v43  ;;  %v331_v40 = vrot.slane %v1174_v7, %v1218_v25  ;;  %v316_v55 = vmul.f32 %v1164_v5, %v315_v46 }
  0x2d   :  { %v262_v47 = vadd.f32 %v260_v33, %v254_v48  ;;  %v302_v53 = vadd.f32 %v300_v50, %v294_v49  ;;  %v339_v56 = vrot.slane %v1179_v8, %v1218_v25  ;;  %v284_v59 = vmul.f32 %v1280_v54, %v282_v62 }
  0x2e   :  { %v277_v57 = vadd.f32 %v275_v21, %v269_v44  ;;  %v347_v60 = vrot.slane %v1184_v9, %v1218_v25  ;;  %v295_v61 = vmul.f32 %v293_v42, %v1227_v30  ;;  %v324_v0 = vmul.f32 %v1169_v6, %v323_v29 }
  0x2f   :  { %v270_v58 = vadd.f32 %v268_v39, %v262_v47  ;;  %v310_v63 = vadd.f32 %v308_v52, %v302_v53  ;;  %v301_v14 = vmul.f32 %v1232_v31, %v299_v38  ;;  %v332_v16 = vmul.f32 %v1174_v7, %v331_v40 }
  0x30   :  { %v285_v15 = vadd.f32 %v283_v27, %v277_v57  ;;  %v340_v17 = vmul.f32 %v1179_v8, %v339_v56  ;;  %v309_v18 = vmul.f32 %v1237_v32, %v307_v43  ;;  %v317_v22 = vmul.f32 %v1242_v34, %v315_v46 }
  0x31   :  { %v278_v19 = vadd.f32 %v276_v51, %v270_v58  ;;  %v318_v62 = vadd.f32 %v316_v55, %v310_v63  ;;  %v303_v21 = vadd.f32 %v301_v14, %v295_v61  ;;  %v348_v23 = vmul.f32 %v1184_v9, %v347_v60 }
  0x32   :  { %1092 = vst [vmem:[%s1947_s1 + $0x30] sm:$0xff] %v285_v15  ;;  %v325_v24 = vmul.f32 %v1247_v35, %v323_v29  ;;  %v333_v26 = vmul.f32 %v1252_v36, %v331_v40  ;;  %v358_v27 = vrot.slane %v1147_v1, %v1335_v20  ;;  %v364_v42 = vrot.slane %v1152_v2, %v1335_v20 }
  0x33   :  { %v286_v33 = vadd.f32 %v284_v59, %v278_v19  ;;  %v326_v37 = vadd.f32 %v324_v0, %v318_v62  ;;  %v311_v39 = vadd.f32 %v309_v18, %v303_v21  ;;  %v372_v45 = vrot.slane %v1159_v4, %v1335_v20 }
  0x34   :  { %v359_v38 = vmul.f32 %v358_v27, %v1147_v1  ;;  %v380_v28 = vrot.slane %v1164_v5, %v1335_v20  ;;  %v388_v43 = vrot.slane %v1169_v6, %v1335_v20  ;;  %v341_v49 = vmul.f32 %v1261_v41, %v339_v56 }
  0x35   :  { %1093 = vst [vmem:[%s1947_s1 + $0x38] sm:$0xff] %v286_v33  ;;  %v334_v46 = vadd.f32 %v332_v16, %v326_v37  ;;  %v319_v48 = vadd.f32 %v317_v22, %v311_v39  ;;  %v365_v50 = vmul.f32 %v1152_v2, %v364_v42  ;;  %v349_v29 = vmul.f32 %v1280_v54, %v347_v60 }
  0x36   :  { %v373_v44 = vmul.f32 %v1159_v4, %v372_v45  ;;  %v396_v51 = vrot.slane %v1174_v7, %v1335_v20  ;;  %v404_v52 = vrot.slane %v1179_v8, %v1335_v20  ;;  %v381_v55 = vmul.f32 %v1164_v5, %v380_v28 }
  0x37   :  { %v342_v40 = vadd.f32 %v340_v17, %v334_v46  ;;  %v327_v47 = vadd.f32 %v325_v24, %v319_v48  ;;  %v367_v53 = vadd.f32 %v365_v50, %v359_v38  ;;  %v389_v57 = vmul.f32 %v1169_v6, %v388_v43 }
  0x38   :  { %v412_v56 = vrot.slane %v1184_v9, %v1335_v20  ;;  %v360_v59 = vmul.f32 %v358_v27, %v1227_v30  ;;  %v366_v60 = vmul.f32 %v1232_v31, %v364_v42  ;;  %v374_v0 = vmul.f32 %v1237_v32, %v372_v45 }
  0x39   :  { %v350_v61 = vadd.f32 %v348_v23, %v342_v40  ;;  %v335_v58 = vadd.f32 %v333_v26, %v327_v47  ;;  %v375_v63 = vadd.f32 %v373_v44, %v367_v53  ;;  %v397_v14 = vmul.f32 %v1174_v7, %v396_v51 }
  0x3a   :  { %v405_v15 = vmul.f32 %v1179_v8, %v404_v52  ;;  %v368_v16 = vadd.f32 %v366_v60, %v360_v59  ;;  %v382_v17 = vmul.f32 %v1242_v34, %v380_v28  ;;  %v413_v62 = vmul.f32 %v1184_v9, %v412_v56 }
  0x3b   :  { %1094 = vst [vmem:[%s1947_s1 + $0x40] sm:$0xff] %v350_v61  ;;  %v343_v18 = vadd.f32 %v341_v49, %v335_v58  ;;  %v383_v19 = vadd.f32 %v381_v55, %v375_v63  ;;  %v390_v21 = vmul.f32 %v1247_v35, %v388_v43  ;;  %v398_v23 = vmul.f32 %v1252_v36, %v396_v51 }
  0x3c   :  { %v376_v22 = vadd.f32 %v374_v0, %v368_v16  ;;  %v406_v24 = vmul.f32 %v1261_v41, %v404_v52  ;;  %v1463_v26 = vsub.s32 6, %v1154_v3  ;;  %v414_v37 = vmul.f32 %v1280_v54, %v412_v56 }
  0x3d   :  { %v351_v27 = vadd.f32 %v349_v29, %v343_v18  ;;  %v391_v33 = vadd.f32 %v389_v57, %v383_v19  ;;  %v1467_v39 = vsub.s32 7, %v1154_v3  ;;  %v1490_v40 = vrot.slane %v1227_v30, %v1187_v10 }
  0x3e   :  { %v384_v42 = vadd.f32 %v382_v17, %v376_v22  ;;  %v423_v38 = vrot.slane %v1147_v1, %v1463_v26  ;;  %v429_v45 = vrot.slane %v1152_v2, %v1463_v26  ;;  %v437_v28 = vrot.slane %v1159_v4, %v1463_v26 }
  0x3f   :  { %1095 = vst [vmem:[%s1947_s1 + $0x48] sm:$0xff] %v351_v27  ;;  %v399_v43 = vadd.f32 %v397_v14, %v391_v33  ;;  %v445_v46 = vrot.slane %v1164_v5, %v1463_v26  ;;  %v453_v3 = vrot.slane %v1169_v6, %v1463_v26  ;;  %v461_v48 = vrot.slane %v1174_v7, %v1463_v26 }
  0x40   :  { %v392_v49 = vadd.f32 %v390_v21, %v384_v42  ;;  %v424_v50 = vmul.f32 %v423_v38, %v1147_v1  ;;  %v430_v29 = vmul.f32 %v1152_v2, %v429_v45  ;;  %v438_v44 = vmul.f32 %v1159_v4, %v437_v28 }
  0x41   :  { %v407_v51 = vadd.f32 %v405_v15, %v399_v43  ;;  %v446_v52 = vmul.f32 %v1164_v5, %v445_v46  ;;  %v1494_v47 = vrot.slane %v1232_v31, %v1187_v10  ;;  %v469_v57 = vrot.slane %v1179_v8, %v1463_v26 }
  0x42   :  { %v400_v53 = vadd.f32 %v398_v23, %v392_v49  ;;  %v432_v55 = vadd.f32 %v430_v29, %v424_v50  ;;  %v477_v56 = vrot.slane %v1184_v9, %v1463_v26  ;;  %v425_v60 = vmul.f32 %v423_v38, %v1227_v30 }
  0x43   :  { %v415_v59 = vadd.f32 %v413_v62, %v407_v51  ;;  %v431_v61 = vmul.f32 %v1232_v31, %v429_v45  ;;  %v439_v58 = vmul.f32 %v1237_v32, %v437_v28  ;;  %v454_v14 = vmul.f32 %v1169_v6, %v453_v3 }
  0x44   :  { %v408_v63 = vadd.f32 %v406_v24, %v400_v53  ;;  %v440_v0 = vadd.f32 %v438_v44, %v432_v55  ;;  %v462_v15 = vmul.f32 %v1174_v7, %v461_v48  ;;  %v470_v16 = vmul.f32 %v1179_v8, %v469_v57 }
  0x45   :  { %1096 = vst [vmem:[%s1947_s1 + $0x50] sm:$0xff] %v415_v59  ;;  %v478_v17 = vmul.f32 %v1184_v9, %v477_v56  ;;  %v433_v18 = vadd.f32 %v431_v61, %v425_v60  ;;  %v447_v19 = vmul.f32 %v1242_v34, %v445_v46  ;;  %v455_v22 = vmul.f32 %v1247_v35, %v453_v3 }
  0x46   :  { %v416_v62 = vadd.f32 %v414_v37, %v408_v63  ;;  %v448_v21 = vadd.f32 %v446_v52, %v440_v0  ;;  %v463_v23 = vmul.f32 %v1252_v36, %v461_v48  ;;  %v488_v27 = vrot.slane %v1147_v1, %v1467_v39 }
  0x47   :  { %v441_v24 = vadd.f32 %v439_v58, %v433_v18  ;;  %v494_v33 = vrot.slane %v1152_v2, %v1467_v39  ;;  %v502_v42 = vrot.slane %v1159_v4, %v1467_v39  ;;  %v510_v38 = vrot.slane %v1164_v5, %v1467_v39 }
  0x48   :  { %1097 = vst [vmem:[%s1947_s1 + $0x58] sm:$0xff] %v416_v62  ;;  %v456_v37 = vadd.f32 %v454_v14, %v448_v21  ;;  %v518_v45 = vrot.slane %v1169_v6, %v1467_v39  ;;  %v526_v28 = vrot.slane %v1174_v7, %v1467_v39  ;;  %v489_v46 = vmul.f32 %v488_v27, %v1147_v1 }
  0x49   :  { %v449_v43 = vadd.f32 %v447_v19, %v441_v24  ;;  %v495_v3 = vmul.f32 %v1152_v2, %v494_v33  ;;  %v503_v48 = vmul.f32 %v1159_v4, %v502_v42  ;;  %v471_v50 = vmul.f32 %v1261_v41, %v469_v57 }
  0x4a   :  { %v464_v49 = vadd.f32 %v462_v15, %v456_v37  ;;  %v479_v29 = vmul.f32 %v1280_v54, %v477_v56  ;;  %v511_v44 = vmul.f32 %v1164_v5, %v510_v38  ;;  %v534_v53 = vrot.slane %v1179_v8, %v1467_v39 }
  0x4b   :  { %v457_v51 = vadd.f32 %v455_v22, %v449_v43  ;;  %v497_v52 = vadd.f32 %v495_v3, %v489_v46  ;;  %v542_v55 = vrot.slane %v1184_v9, %v1467_v39  ;;  %v490_v60 = vmul.f32 %v488_v27, %v1227_v30 }
  0x4c   :  { %v472_v59 = vadd.f32 %v470_v16, %v464_v49  ;;  %v496_v61 = vmul.f32 %v1232_v31, %v494_v33  ;;  %v504_v58 = vmul.f32 %v1237_v32, %v502_v42  ;;  %v519_v56 = vmul.f32 %v1169_v6, %v518_v45 }
  0x4d   :  { %v465_v57 = vadd.f32 %v463_v23, %v457_v51  ;;  %v505_v63 = vadd.f32 %v503_v48, %v497_v52  ;;  %v527_v0 = vmul.f32 %v1174_v7, %v526_v28  ;;  %v535_v15 = vmul.f32 %v1179_v8, %v534_v53 }
  0x4e   :  { %v480_v14 = vadd.f32 %v478_v17, %v472_v59  ;;  %v498_v18 = vadd.f32 %v496_v61, %v490_v60  ;;  %v512_v19 = vmul.f32 %v1242_v34, %v510_v38  ;;  %v543_v21 = vmul.f32 %v1184_v9, %v542_v55 }
  0x4f   :  { %v473_v62 = vadd.f32 %v471_v50, %v465_v57  ;;  %v513_v16 = vadd.f32 %v511_v44, %v505_v63  ;;  %v520_v22 = vmul.f32 %v1247_v35, %v518_v45  ;;  %v528_v24 = vmul.f32 %v1252_v36, %v526_v28 }
  0x50   :  { %1098 = vst [vmem:[%s1947_s1 + $0x60] sm:$0xff] %v480_v14  ;;  %v506_v23 = vadd.f32 %v504_v58, %v498_v18  ;;  %v554_v17 = vmul.f32 %v1490_v40, %v1147_v1  ;;  %v560_v27 = vmul.f32 %v1152_v2, %v1494_v47  ;;  %v567_v37 = vrot.slane %v1237_v32, %v1187_v10 }
  0x51   :  { %v481_v33 = vadd.f32 %v479_v29, %v473_v62  ;;  %v521_v42 = vadd.f32 %v519_v56, %v513_v16  ;;  %v575_v38 = vrot.slane %v1242_v34, %v1187_v10  ;;  %v583_v46 = vrot.slane %v1247_v35, %v1187_v10 }
  0x52   :  { %v514_v45 = vadd.f32 %v512_v19, %v506_v23  ;;  %v562_v43 = vadd.f32 %v560_v27, %v554_v17  ;;  %v591_v28 = vrot.slane %v1252_v36, %v1187_v10  ;;  %v568_v48 = vmul.f32 %v1159_v4, %v567_v37 }
  0x53   :  { %1099 = vst [vmem:[%s1947_s1 + $0x68] sm:$0xff] %v481_v33  ;;  %v529_v3 = vadd.f32 %v527_v0, %v521_v42  ;;  %v576_v49 = vmul.f32 %v1164_v5, %v575_v38  ;;  %v599_v50 = vrot.slane %v1261_v41, %v1187_v10  ;;  %v536_v44 = vmul.f32 %v1261_v41, %v534_v53 }
  0x54   :  { %v522_v29 = vadd.f32 %v520_v22, %v514_v45  ;;  %v544_v51 = vmul.f32 %v1280_v54, %v542_v55  ;;  %v607_v52 = vrot.slane %v1280_v54, %v1187_v10  ;;  %v570_v60 = vadd.f32 %v568_v48, %v562_v43 }
  0x55   :  { %v537_v59 = vadd.f32 %v535_v15, %v529_v3  ;;  %v584_v61 = vmul.f32 %v1169_v6, %v583_v46  ;;  %v555_v58 = vmul.f32 %v1490_v40, %v1227_v30  ;;  %v592_v63 = vmul.f32 %v1174_v7, %v591_v28 }
  0x56   :  { %v530_v57 = vadd.f32 %v528_v24, %v522_v29  ;;  %v561_v56 = vmul.f32 %v1232_v31, %v1494_v47  ;;  %v569_v53 = vmul.f32 %v1237_v32, %v567_v37  ;;  %v578_v55 = vadd.f32 %v576_v49, %v570_v60 }
  0x57   :  { %v545_v0 = vadd.f32 %v543_v21, %v537_v59  ;;  %v600_v14 = vmul.f32 %v1179_v8, %v599_v50  ;;  %v608_v10 = vmul.f32 %v1184_v9, %v607_v52  ;;  %v577_v19 = vmul.f32 %v1242_v34, %v575_v38 }
  0x58   :  { %v538_v15 = vadd.f32 %v536_v44, %v530_v57  ;;  %v563_v18 = vadd.f32 %v561_v56, %v555_v58  ;;  %v585_v40 = vmul.f32 %v1247_v35, %v583_v46  ;;  %v586_v62 = vadd.f32 %v584_v61, %v578_v55 }
  0x59   :  { %1100 = vst [vmem:[%s1947_s1 + $0x70] sm:$0xff] %v545_v0  ;;  %v593_v47 = vmul.f32 %v1252_v36, %v591_v28  ;;  %v618_v16 = vrot.slane %v1227_v30, %v1190_v11  ;;  %v624_v21 = vrot.slane %v1232_v31, %v1190_v11  ;;  %v632_v24 = vrot.slane %v1237_v32, %v1190_v11 }
  0x5a   :  { %v546_v22 = vadd.f32 %v544_v51, %v538_v15  ;;  %v571_v23 = vadd.f32 %v569_v53, %v563_v18  ;;  %v640_v17 = vrot.slane %v1242_v34, %v1190_v11  ;;  %v594_v27 = vadd.f32 %v592_v63, %v586_v62 }
  0x5b   :  { %v619_v33 = vmul.f32 %v618_v16, %v1147_v1  ;;  %v625_v42 = vmul.f32 %v1152_v2, %v624_v21  ;;  %v648_v37 = vrot.slane %v1247_v35, %v1190_v11  ;;  %v601_v45 = vmul.f32 %v1261_v41, %v599_v50 }
  0x5c   :  { %1101 = vst [vmem:[%s1947_s1 + $0x78] sm:$0xff] %v546_v22  ;;  %v579_v38 = vadd.f32 %v577_v19, %v571_v23  ;;  %v633_v43 = vmul.f32 %v1159_v4, %v632_v24  ;;  %v656_v46 = vrot.slane %v1252_v36, %v1190_v11  ;;  %v602_v28 = vadd.f32 %v600_v14, %v594_v27 }
  0x5d   :  { %v627_v3 = vadd.f32 %v625_v42, %v619_v33  ;;  %v641_v48 = vmul.f32 %v1164_v5, %v640_v17  ;;  %v664_v49 = vrot.slane %v1261_v41, %v1190_v11  ;;  %v609_v44 = vmul.f32 %v1280_v54, %v607_v52 }
  0x5e   :  { %v587_v29 = vadd.f32 %v585_v40, %v579_v38  ;;  %v672_v51 = vrot.slane %v1280_v54, %v1190_v11  ;;  %v620_v50 = vmul.f32 %v618_v16, %v1227_v30  ;;  %v610_v59 = vadd.f32 %v608_v10, %v602_v28 }
  0x5f   :  { %v635_v60 = vadd.f32 %v633_v43, %v627_v3  ;;  %v649_v61 = vmul.f32 %v1169_v6, %v648_v37  ;;  %v626_v58 = vmul.f32 %v1232_v31, %v624_v21  ;;  %v657_v63 = vmul.f32 %v1174_v7, %v656_v46 }
  0x60   :  { %v595_v57 = vadd.f32 %v593_v47, %v587_v29  ;;  %v665_v56 = vmul.f32 %v1179_v8, %v664_v49  ;;  %v634_v53 = vmul.f32 %v1237_v32, %v632_v24  ;;  %1102 = vst [vmem:[%s1947_s1 + $0x80] sm:$0xff] %v610_v59  ;;  %v673_v52 = vmul.f32 %v1184_v9, %v672_v51 }
  0x61   :  { %v643_v11 = vadd.f32 %v641_v48, %v635_v60  ;;  %v628_v0 = vadd.f32 %v626_v58, %v620_v50  ;;  %v642_v55 = vmul.f32 %v1242_v34, %v640_v17  ;;  %v650_v10 = vmul.f32 %v1247_v35, %v648_v37 }
  0x62   :  { %v603_v14 = vadd.f32 %v601_v45, %v595_v57  ;;  %v658_v15 = vmul.f32 %v1252_v36, %v656_v46  ;;  %v683_v18 = vrot.slane %v1227_v30, %v1193_v12  ;;  %v689_v62 = vrot.slane %v1232_v31, %v1193_v12 }
  0x63   :  { %v651_v19 = vadd.f32 %v649_v61, %v643_v11  ;;  %v636_v40 = vadd.f32 %v634_v53, %v628_v0  ;;  %v697_v47 = vrot.slane %v1237_v32, %v1193_v12  ;;  %v705_v22 = vrot.slane %v1242_v34, %v1193_v12 }
  0x64   :  { %v611_v16 = vadd.f32 %v609_v44, %v603_v14  ;;  %v684_v21 = vmul.f32 %v683_v18, %v1147_v1  ;;  %v713_v23 = vrot.slane %v1247_v35, %v1193_v12  ;;  %v690_v27 = vmul.f32 %v1152_v2, %v689_v62 }
  0x65   :  { %v659_v24 = vadd.f32 %v657_v63, %v651_v19  ;;  %v644_v17 = vadd.f32 %v642_v55, %v636_v40  ;;  %v698_v33 = vmul.f32 %v1159_v4, %v697_v47  ;;  %v666_v42 = vmul.f32 %v1261_v41, %v664_v49 }
  0x66   :  { %1103 = vst [vmem:[%s1947_s1 + $0x88] sm:$0xff] %v611_v16  ;;  %v706_v37 = vmul.f32 %v1164_v5, %v705_v22  ;;  %v721_v38 = vrot.slane %v1252_v36, %v1193_v12  ;;  %v729_v45 = vrot.slane %v1261_v41, %v1193_v12  ;;  %v692_v28 = vadd.f32 %v690_v27, %v684_v21 }
  0x67   :  { %v667_v43 = vadd.f32 %v665_v56, %v659_v24  ;;  %v652_v46 = vadd.f32 %v650_v10, %v644_v17  ;;  %v737_v3 = vrot.slane %v1280_v54, %v1193_v12  ;;  %v674_v48 = vmul.f32 %v1280_v54, %v672_v51 }
  0x68   :  { %v714_v29 = vmul.f32 %v1169_v6, %v713_v23  ;;  %v685_v49 = vmul.f32 %v683_v18, %v1227_v30  ;;  %v691_v44 = vmul.f32 %v1232_v31, %v689_v62  ;;  %v700_v60 = vadd.f32 %v698_v33, %v692_v28 }
  0x69   :  { %v675_v50 = vadd.f32 %v673_v52, %v667_v43  ;;  %v660_v59 = vadd.f32 %v658_v15, %v652_v46  ;;  %v722_v61 = vmul.f32 %v1174_v7, %v721_v38  ;;  %v730_v58 = vmul.f32 %v1179_v8, %v729_v45 }
  0x6a   :  { %v693_v57 = vadd.f32 %v691_v44, %v685_v49  ;;  %v699_v63 = vmul.f32 %v1237_v32, %v697_v47  ;;  %v707_v12 = vmul.f32 %v1242_v34, %v705_v22  ;;  %v708_v56 = vadd.f32 %v706_v37, %v700_v60 }
  0x6b   :  { %1104 = vst [vmem:[%s1947_s1 + $0x90] sm:$0xff] %v675_v50  ;;  %v668_v51 = vadd.f32 %v666_v42, %v660_v59  ;;  %v738_v53 = vmul.f32 %v1184_v9, %v737_v3  ;;  %v715_v11 = vmul.f32 %v1247_v35, %v713_v23  ;;  %v723_v0 = vmul.f32 %v1252_v36, %v721_v38 }
  0x6c   :  { %v701_v52 = vadd.f32 %v699_v63, %v693_v57  ;;  %v748_v55 = vrot.slane %v1227_v30, %v1196_v13  ;;  %v754_v14 = vrot.slane %v1232_v31, %v1196_v13  ;;  %v716_v15 = vadd.f32 %v714_v29, %v708_v56 }
  0x6d   :  { %v676_v10 = vadd.f32 %v674_v48, %v668_v51  ;;  %v762_v18 = vrot.slane %v1237_v32, %v1196_v13  ;;  %v770_v19 = vrot.slane %v1242_v34, %v1196_v13  ;;  %v778_v16 = vrot.slane %v1247_v35, %v1196_v13 }
  0x6e   :  { %v709_v40 = vadd.f32 %v707_v12, %v701_v52  ;;  %v749_v62 = vmul.f32 %v748_v55, %v1147_v1  ;;  %v755_v47 = vmul.f32 %v1152_v2, %v754_v14  ;;  %v724_v21 = vadd.f32 %v722_v61, %v716_v15 }
  0x6f   :  { %1105 = vst [vmem:[%s1947_s1 + $0x98] sm:$0xff] %v676_v10  ;;  %v731_v22 = vmul.f32 %v1261_v41, %v729_v45  ;;  %v763_v23 = vmul.f32 %v1159_v4, %v762_v18  ;;  %v786_v24 = vrot.slane %v1252_v36, %v1196_v13  ;;  %v771_v33 = vmul.f32 %v1164_v5, %v770_v19 }
  0x70   :  { %v717_v17 = vadd.f32 %v715_v11, %v709_v40  ;;  %v757_v27 = vadd.f32 %v755_v47, %v749_v62  ;;  %v794_v42 = vrot.slane %v1261_v41, %v1196_v13  ;;  %v732_v37 = vadd.f32 %v730_v58, %v724_v21 }
  0x71   :  { %v739_v38 = vmul.f32 %v1280_v54, %v737_v3  ;;  %v802_v43 = vrot.slane %v1280_v54, %v1196_v13  ;;  %v750_v45 = vmul.f32 %v748_v55, %v1227_v30  ;;  %v779_v48 = vmul.f32 %v1169_v6, %v778_v16 }
  0x72   :  { %v725_v46 = vadd.f32 %v723_v0, %v717_v17  ;;  %v765_v28 = vadd.f32 %v763_v23, %v757_v27  ;;  %v756_v29 = vmul.f32 %v1232_v31, %v754_v14  ;;  %v740_v49 = vadd.f32 %v738_v53, %v732_v37 }
  0x73   :  { %v787_v44 = vmul.f32 %v1174_v7, %v786_v24  ;;  %v795_v50 = vmul.f32 %v1179_v8, %v794_v42  ;;  %v764_v59 = vmul.f32 %v1237_v32, %v762_v18  ;;  %v772_v13 = vmul.f32 %v1242_v34, %v770_v19 }
  0x74   :  { %v733_v60 = vadd.f32 %v731_v22, %v725_v46  ;;  %v773_v3 = vadd.f32 %v771_v33, %v765_v28  ;;  %v758_v61 = vadd.f32 %v756_v29, %v750_v45  ;;  %1106 = vst [vmem:[%s1947_s1 + $0xa0] sm:$0xff] %v740_v49  ;;  %v803_v58 = vmul.f32 %v1184_v9, %v802_v43  ;;  %v1735_v33 = vld [vmem:[%s1946_s0 + $0x50] sm:$0xff] }
  0x75   :  { %v780_v57 = vmul.f32 %v1247_v35, %v778_v16  ;;  %v788_v63 = vmul.f32 %v1252_v36, %v786_v24  ;;  %v813_v7 = vrot.slane %v1227_v30, %v1218_v25  ;;  %v819_v56 = vrot.slane %v1232_v31, %v1218_v25  ;;  %v1751_v45 = vld [vmem:[%s1946_s0 + $0x70] sm:$0xff] }
  0x76   :  { %v741_v8 = vadd.f32 %v739_v38, %v733_v60  ;;  %v781_v12 = vadd.f32 %v779_v48, %v773_v3  ;;  %v766_v51 = vadd.f32 %v764_v59, %v758_v61  ;;  %v827_v11 = vrot.slane %v1237_v32, %v1218_v25 }
  0x77   :  { %v814_v53 = vmul.f32 %v813_v7, %v1147_v1  ;;  %v835_v9 = vrot.slane %v1242_v34, %v1218_v25  ;;  %v843_v52 = vrot.slane %v1247_v35, %v1218_v25  ;;  %v796_v14 = vmul.f32 %v1261_v41, %v794_v42 }
  0x78   :  { %1107 = vst [vmem:[%s1947_s1 + $0xa8] sm:$0xff] %v741_v8  ;;  %v789_v0 = vadd.f32 %v787_v44, %v781_v12  ;;  %v774_v55 = vadd.f32 %v772_v13, %v766_v51  ;;  %v820_v10 = vmul.f32 %v1152_v2, %v819_v56  ;;  %v804_v1 = vmul.f32 %v1280_v54, %v802_v43  ;;  %v1767_v13 = vld [vmem:[%s1946_s0] sm:$0xff] }
  0x79   :  { %v828_v15 = vmul.f32 %v1159_v4, %v827_v11  ;;  %v851_v18 = vrot.slane %v1252_v36, %v1218_v25  ;;  %v859_v19 = vrot.slane %v1261_v41, %v1218_v25  ;;  %v836_v16 = vmul.f32 %v1164_v5, %v835_v9 }
  0x7a   :  { %v797_v40 = vadd.f32 %v795_v50, %v789_v0  ;;  %v782_v62 = vadd.f32 %v780_v57, %v774_v55  ;;  %v822_v47 = vadd.f32 %v820_v10, %v814_v53  ;;  %v844_v21 = vmul.f32 %v1169_v6, %v843_v52  ;;  %v1741_v6 = vld [vmem:[%s1946_s0 + $0x60] sm:$0xff] }
  0x7b   :  { %v867_v2 = vrot.slane %v1280_v54, %v1218_v25  ;;  %v815_v22 = vmul.f32 %v813_v7, %v1227_v30  ;;  %v821_v4 = vmul.f32 %v1232_v31, %v819_v56  ;;  %v829_v27 = vmul.f32 %v1237_v32, %v827_v11  ;;  %v1794_v56 = vld [vmem:[%s1946_s0 + $0x30] sm:$0xff]  ;;  %v1810_v10 = vld [vmem:[%s1946_s0 + $0x40] sm:$0xff] }
  0x7c   :  { %v805_v23 = vadd.f32 %v803_v58, %v797_v40  ;;  %v790_v24 = vadd.f32 %v788_v63, %v782_v62  ;;  %v830_v17 = vadd.f32 %v828_v15, %v822_v47  ;;  %v852_v5 = vmul.f32 %v1735_v33, %v851_v18  ;;  %v1785_v63 = vld [vmem:[%s1946_s0 + $0x20] sm:$0xff] }
  0x7d   :  { %v860_v25 = vmul.f32 %v1741_v6, %v859_v19  ;;  %v823_v42 = vadd.f32 %v821_v4, %v815_v22  ;;  %v837_v37 = vmul.f32 %v1242_v34, %v835_v9  ;;  %v868_v46 = vmul.f32 %v1751_v45, %v867_v2  ;;  %v1840_v4 = vld [vmem:[%s1946_s0 + $0x48] sm:$0xff] }
  0x7e   :  { %1108 = vst [vmem:[%s1947_s1 + $0xb0] sm:$0xff] %v805_v23  ;;  %v798_v38 = vadd.f32 %v796_v14, %v790_v24  ;;  %v838_v43 = vadd.f32 %v836_v16, %v830_v17  ;;  %v845_v28 = vmul.f32 %v1247_v35, %v843_v52  ;;  %v853_v29 = vmul.f32 %v1252_v36, %v851_v18  ;;  %v1823_v18 = vld [vmem:[%s1946_s0 + $0x28] sm:$0xff]  ;;  %v1829_v16 = vld [vmem:[%s1946_s0 + $0x38] sm:$0xff] }
  0x7f   :  { %v831_v48 = vadd.f32 %v829_v27, %v823_v42  ;;  %v878_v49 = vrot.slane %v1227_v30, %v1335_v20  ;;  %v884_v44 = vrot.slane %v1232_v31, %v1335_v20  ;;  %v892_v60 = vrot.slane %v1237_v32, %v1335_v20  ;;  %v1773_v30 = vld [vmem:[%s1946_s0 + $0x10] sm:$0xff] }
  0x80   :  { %v806_v50 = vadd.f32 %v804_v1, %v798_v38  ;;  %v846_v59 = vadd.f32 %v844_v21, %v838_v43  ;;  %v900_v3 = vrot.slane %v1242_v34, %v1335_v20  ;;  %v908_v32 = vrot.slane %v1247_v35, %v1335_v20 }
  0x81   :  { %v839_v61 = vadd.f32 %v837_v37, %v831_v48  ;;  %v879_v58 = vmul.f32 %v1767_v13, %v878_v49  ;;  %v885_v31 = vmul.f32 %v1773_v30, %v884_v44  ;;  %v861_v57 = vmul.f32 %v1261_v41, %v859_v19  ;;  %v1860_v48 = vld [vmem:[%s1946_s0 + $0x58] sm:$0xff] }
  0x82   :  { %1109 = vst [vmem:[%s1947_s1 + $0xb8] sm:$0xff] %v806_v50  ;;  %v854_v34 = vadd.f32 %v852_v5, %v846_v59  ;;  %v893_v7 = vmul.f32 %v1785_v63, %v892_v60  ;;  %v916_v8 = vrot.slane %v1252_v36, %v1335_v20  ;;  %v869_v35 = vmul.f32 %v1280_v54, %v867_v2  ;;  %v1804_v36 = vld [vmem:[%s1946_s0 + $0x8] sm:$0xff] }
  0x83   :  { %v847_v12 = vadd.f32 %v845_v28, %v839_v61  ;;  %v887_v51 = vadd.f32 %v885_v31, %v879_v58  ;;  %v901_v53 = vmul.f32 %v1794_v56, %v900_v3  ;;  %v924_v9 = vrot.slane %v1261_v41, %v1335_v20  ;;  %v1816_v41 = vld [vmem:[%s1946_s0 + $0x18] sm:$0xff] }
  0x84   :  { %v862_v11 = vadd.f32 %v860_v25, %v854_v34  ;;  %v932_v52 = vrot.slane %v1280_v54, %v1335_v20  ;;  %v880_v0 = vmul.f32 %v1804_v36, %v878_v49  ;;  %v909_v1 = vmul.f32 %v1810_v10, %v908_v32  ;;  %v1879_v34 = vld [vmem:[%s1946_s0 + $0x78] sm:$0xff] }
  0x85   :  { %v855_v55 = vadd.f32 %v853_v29, %v847_v12  ;;  %v895_v14 = vadd.f32 %v893_v7, %v887_v51  ;;  %v886_v54 = vmul.f32 %v1816_v41, %v884_v44  ;;  %v917_v15 = vmul.f32 %v1735_v33, %v916_v8  ;;  %v1867_v44 = vld [vmem:[%s1946_s0 + $0x68] sm:$0xff] }
  0x86   :  { %v870_v20 = vadd.f32 %v868_v46, %v862_v11  ;;  %v894_v19 = vmul.f32 %v1823_v18, %v892_v60  ;;  %v902_v21 = vmul.f32 %v1829_v16, %v900_v3  ;;  %v925_v2 = vmul.f32 %v1741_v6, %v924_v9 }
  0x87   :  { %v863_v40 = vadd.f32 %v861_v57, %v855_v55  ;;  %v903_v62 = vadd.f32 %v901_v53, %v895_v14  ;;  %v888_v47 = vadd.f32 %v886_v54, %v880_v0  ;;  %v933_v22 = vmul.f32 %v1751_v45, %v932_v52 }
  0x88   :  { %1110 = vst [vmem:[%s1947_s1 + $0xc0] sm:$0xff] %v870_v20  ;;  %v910_v23 = vmul.f32 %v1840_v4, %v908_v32  ;;  %v943_v24 = vrot.slane %v1804_v36, %v1463_v26  ;;  %v949_v25 = vrot.slane %v1816_v41, %v1463_v26  ;;  %v957_v37 = vrot.slane %v1823_v18, %v1463_v26 }
  0x89   :  { %v871_v17 = vadd.f32 %v869_v35, %v863_v40  ;;  %v911_v27 = vadd.f32 %v909_v1, %v903_v62  ;;  %v896_v5 = vadd.f32 %v894_v19, %v888_v47  ;;  %v965_v38 = vrot.slane %v1829_v16, %v1463_v26 }
  0x8a   :  { %v944_v42 = vmul.f32 %v1767_v13, %v943_v24  ;;  %v973_v43 = vrot.slane %v1840_v4, %v1463_v26  ;;  %v918_v29 = vmul.f32 %v1860_v48, %v916_v8  ;;  %v950_v49 = vmul.f32 %v1773_v30, %v949_v25 }
  0x8b   :  { %1111 = vst [vmem:[%s1947_s1 + $0xc8] sm:$0xff] %v871_v17  ;;  %v919_v46 = vadd.f32 %v917_v15, %v911_v27  ;;  %v904_v28 = vadd.f32 %v902_v21, %v896_v5  ;;  %v926_v50 = vmul.f32 %v1867_v44, %v924_v9  ;;  %v958_v59 = vmul.f32 %v1785_v63, %v957_v37 }
  0x8c   :  { %v981_v60 = vrot.slane %v1860_v48, %v1463_v26  ;;  %v989_v3 = vrot.slane %v1867_v44, %v1463_v26  ;;  %v952_v31 = vadd.f32 %v950_v49, %v944_v42  ;;  %v966_v32 = vmul.f32 %v1794_v56, %v965_v38 }
  0x8d   :  { %v927_v61 = vadd.f32 %v925_v2, %v919_v46  ;;  %v912_v58 = vadd.f32 %v910_v23, %v904_v28  ;;  %v934_v57 = vmul.f32 %v1879_v34, %v932_v52  ;;  %v974_v7 = vmul.f32 %v1810_v10, %v973_v43 }
  0x8e   :  { %v945_v8 = vmul.f32 %v1804_v36, %v943_v24  ;;  %v951_v12 = vmul.f32 %v1816_v41, %v949_v25  ;;  %v960_v53 = vadd.f32 %v958_v59, %v952_v31  ;;  %v959_v11 = vmul.f32 %v1823_v18, %v957_v37 }
  0x8f   :  { %v935_v35 = vadd.f32 %v933_v22, %v927_v61  ;;  %v920_v51 = vadd.f32 %v918_v29, %v912_v58  ;;  %v982_v9 = vmul.f32 %v1735_v33, %v981_v60  ;;  %v990_v0 = vmul.f32 %v1741_v6, %v989_v3 }
  0x90   :  { %v953_v55 = vadd.f32 %v951_v12, %v945_v8  ;;  %v967_v14 = vmul.f32 %v1829_v16, %v965_v38  ;;  %v968_v1 = vadd.f32 %v966_v32, %v960_v53  ;;  %v997_v54 = vrot.slane %v1879_v34, %v1463_v26 }
  0x91   :  { %1112 = vst [vmem:[%s1947_s1 + $0xd0] sm:$0xff] %v935_v35  ;;  %v928_v52 = vadd.f32 %v926_v50, %v920_v51  ;;  %v975_v20 = vmul.f32 %v1840_v4, %v973_v43  ;;  %v983_v19 = vmul.f32 %v1860_v48, %v981_v60  ;;  %v1008_v40 = vrot.slane %v1804_v36, %v1467_v39 }
  0x92   :  { %v961_v15 = vadd.f32 %v959_v11, %v953_v55  ;;  %v1014_v62 = vrot.slane %v1816_v41, %v1467_v39  ;;  %v976_v21 = vadd.f32 %v974_v7, %v968_v1  ;;  %v1022_v2 = vrot.slane %v1823_v18, %v1467_v39 }
  0x93   :  { %v936_v47 = vadd.f32 %v934_v57, %v928_v52  ;;  %v1030_v22 = vrot.slane %v1829_v16, %v1467_v39  ;;  %v1009_v23 = vmul.f32 %v1767_v13, %v1008_v40  ;;  %v1038_v17 = vrot.slane %v1840_v4, %v1467_v39 }
  0x94   :  { %v969_v26 = vadd.f32 %v967_v14, %v961_v15  ;;  %v1015_v24 = vmul.f32 %v1773_v30, %v1014_v62  ;;  %v984_v27 = vadd.f32 %v982_v9, %v976_v21  ;;  %v998_v5 = vmul.f32 %v1751_v45, %v997_v54 }
  0x95   :  { %1113 = vst [vmem:[%s1947_s1 + $0xd8] sm:$0xff] %v936_v47  ;;  %v1023_v25 = vmul.f32 %v1785_v63, %v1022_v2  ;;  %v1046_v42 = vrot.slane %v1860_v48, %v1467_v39  ;;  %v991_v13 = vmul.f32 %v1867_v44, %v989_v3  ;;  %v1031_v30 = vmul.f32 %v1794_v56, %v1030_v22 }
  0x96   :  { %v977_v37 = vadd.f32 %v975_v20, %v969_v26  ;;  %v1017_v38 = vadd.f32 %v1015_v24, %v1009_v23  ;;  %v992_v43 = vadd.f32 %v990_v0, %v984_v27  ;;  %v999_v46 = vmul.f32 %v1879_v34, %v997_v54 }
  0x97   :  { %v1054_v28 = vrot.slane %v1867_v44, %v1467_v39  ;;  %v1010_v29 = vmul.f32 %v1804_v36, %v1008_v40  ;;  %v1039_v63 = vmul.f32 %v1810_v10, %v1038_v17  ;;  %v1016_v59 = vmul.f32 %v1816_v41, %v1014_v62 }
  0x98   :  { %v985_v49 = vadd.f32 %v983_v19, %v977_v37  ;;  %v1025_v50 = vadd.f32 %v1023_v25, %v1017_v38  ;;  %v1000_v60 = vadd.f32 %v998_v5, %v992_v43  ;;  %v1047_v3 = vmul.f32 %v1735_v33, %v1046_v42 }
  0x99   :  { %v1062_v56 = vrot.slane %v1879_v34, %v1467_v39  ;;  %v1024_v61 = vmul.f32 %v1823_v18, %v1022_v2  ;;  %v1018_v32 = vadd.f32 %v1016_v59, %v1010_v29  ;;  %v1032_v57 = vmul.f32 %v1829_v16, %v1030_v22 }
  0x9a   :  { %v993_v58 = vadd.f32 %v991_v13, %v985_v49  ;;  %v1033_v31 = vadd.f32 %v1031_v30, %v1025_v50  ;;  %1114 = vst [vmem:[%s1947_s1 + $0xe0] sm:$0xff] %v1000_v60  ;;  %v1055_v36 = vmul.f32 %v1741_v6, %v1054_v28  ;;  %v1040_v33 = vmul.f32 %v1840_v4, %v1038_v17 }
  0x9b   :  { %v1026_v7 = vadd.f32 %v1024_v61, %v1018_v32  ;;  %v1063_v18 = vmul.f32 %v1751_v45, %v1062_v56  ;;  %v1048_v16 = vmul.f32 %v1860_v48, %v1046_v42  ;;  %v1056_v51 = vmul.f32 %v1867_v44, %v1054_v28 }
  0x9c   :  { %v1001_v10 = vadd.f32 %v999_v46, %v993_v58  ;;  %v1041_v41 = vadd.f32 %v1039_v63, %v1033_v31  ;;  %v1064_v11 = vmul.f32 %v1879_v34, %v1062_v56 }
  0x9d   :  { %v1034_v8 = vadd.f32 %v1032_v57, %v1026_v7 }
  0x9e   :  { %1115 = vst [vmem:[%s1947_s1 + $0xe8] sm:$0xff] %v1001_v10  ;;  %v1049_v39 = vadd.f32 %v1047_v3, %v1041_v41 }
  0x9f   :  { %v1042_v35 = vadd.f32 %v1040_v33, %v1034_v8 }
  0xa0   :  { %v1057_v12 = vadd.f32 %v1055_v36, %v1049_v39 }
  0xa1   :  { %v1050_v53 = vadd.f32 %v1048_v16, %v1042_v35 }
  0xa2   :  { %v1065_v6 = vadd.f32 %v1063_v18, %v1057_v12 }
  0xa3   :  { %v1058_v4 = vadd.f32 %v1056_v51, %v1050_v53 }
  0xa4   :  { %1116 = vst [vmem:[%s1947_s1 + $0xf0] sm:$0xff] %v1065_v6 }
  0xa5   :  { %v1066_v9 = vadd.f32 %v1064_v11, %v1058_v4 }
  0xa7   :  { %1117 = vst [vmem:[%s1947_s1 + $0xf8] sm:$0xff] %v1066_v9 }

</bundles_post_ra>
